<compile_context>
chip_gen: v7x
topology: tpu7x:2x2x1
jax: 0.10.0
libtpu: 0.0.40
codegen_flags: <defaults>
</compile_context>

<pallas_src>
import jax
import jax.numpy as jnp
from jax import lax
from jax.experimental import pallas as pl
from jax.experimental.pallas import tpu as pltpu

# ---- hyperparameters from `args` (deterministic, in-script) -----------------
GAMMA    = 0.5      # args.gamma
LAMB     = 0.1      # args.lamb
LR_Z     = 1e-2     # args.lr_Z   (AdamW over Zk, fresh optimizer -> step 1)
LR_A     = 1e-3     # optA lr     (AdamW over netA kernel, assumed step 1)
WD       = 1e-2     # AdamW default weight decay
ADAM_EPS = 1e-8     # AdamW default eps
ETA      = 0.9      # args.eta    (nn.Parameter(torch.ones(1)*args.eta))

VMEM_SPEC = pl.BlockSpec(memory_space=pltpu.MemorySpace.VMEM)


# ---------------------------------------------------------------------------
# Fused kernel (constants baked via closure; shapes are static)
# ---------------------------------------------------------------------------

def _make_kernel(N, H, W, C, Lpad):
    Hp, Wp = H + 2, W + 2
    inv_n = 2.0 / (N * H * W * C)                 # MSE 'mean' grad factor
    # flat-lane offset of tap (dy,dx) relative to an interior pixel
    offs = [(dy - 1) * Wp + (dx - 1) for dy in range(3) for dx in range(3)]

    def gather(x, o):
        # out[:, p] = x[:, p + o]  (circular; interior pixels never wrap)
        s = (-o) % Lpad
        return x if s == 0 else pltpu.roll(x, s, axis=1)

    def stack_taps(x, sign):
        # in-VMEM "transposed im2col": (8, Lpad) -> (72, Lpad), row = tap*8 + ch
        return jnp.concatenate([gather(x, sign * o) for o in offs], axis=0)

    def kernel(z_ref, xk_ref, dy_ref, ysub_ref, mask_ref, w_ref, af_ref,
               zk_new_ref, xk_new_ref, a_new_ref):
        # hoist the sublane broadcast of the interior mask (done once, reused)
        m8 = jnp.broadcast_to(mask_ref[...], (8, Lpad))
        z8 = z_ref[...]                            # (8, Lpad)
        ysub = ysub_ref[...]                       # (8, Lpad)  inv_n-scaled [y;0]
        w_res = w_ref[0]                           # (8, 72)  inv_n*[rA ; rA0] residual conv
        w_bwd = w_ref[1]                           # (8, 72)  transposed-conv (dL/dZ)
        w_r   = w_ref[2]                           # (8, 72)  eta*[WR|WY]  (R step)

        # ---- step 1: one AdamW step on Zk --------------------------------
        pz = stack_taps(z8, +1)                    # (72, Lpad)
        r8 = m8 * (jnp.dot(w_res, pz, preferred_element_type=jnp.float32) - ysub)
        pr = stack_taps(r8, -1)                    # (72, Lpad)
        g = jnp.dot(w_bwd, pr, preferred_element_type=jnp.float32)
        g = m8 * (g + (LAMB * inv_n) * (z8 - xk_ref[...]))
        upd = g * pl.reciprocal(jnp.abs(g) + ADAM_EPS, approx=True)
        zn = z8 * (1.0 - LR_Z * WD) - LR_Z * upd   # pads stay exactly 0
        zk_new_ref[...] = zn

        # ---- step 2: one AdamW step on netA's kernel A (with new Zk) ------
        pz2 = stack_taps(zn, +1)                   # reused for conv AND dL/dA
        ra2 = m8 * (jnp.dot(w_res, pz2, preferred_element_type=jnp.float32) - ysub)
        # gA[tap*8+ci, co] = sum_p z_new[ci, p+o_tap] * rA2[co, p]
        ga = lax.dot_general(pz2, ra2, (((1,), (1,)), ((), ())),
                             preferred_element_type=jnp.float32)      # (72, 8)
        upd_a = ga * pl.reciprocal(jnp.abs(ga) + ADAM_EPS, approx=True)
        a_new_ref[...] = af_ref[...] * (1.0 - LR_A * WD) - LR_A * upd_a

        # ---- step 3: Xk_new = R(Xk - X0, Zk_new, y) -----------------------
        pd = stack_taps(dy_ref[...], +1)
        xk_new_ref[...] = zn + jnp.dot(w_r, pd, preferred_element_type=jnp.float32)

    return kernel


# ---------------------------------------------------------------------------
# Wrapper: layout plumbing (pad/transpose) + weight slab packing
# ---------------------------------------------------------------------------

def deq_kth_iter_forward(Xk, y, Zk, X0, A0, A, WR, WY, eta):
    N, H, W, C = Xk.shape
    assert C <= 8 and A0.shape[0] == 3
    Hp, Wp = H + 2, W + 2
    L = N * Hp * Wp
    Lpad = ((L + 127) // 128) * 128
    inv_n = 2.0 / (N * H * W * C)

    def planes(x):
        # (N,H,W,c) -> (8, Lpad): channel-major, zero spatial pad, flat, lane pad
        c = x.shape[-1]
        xp = jnp.pad(x, ((0, 0), (1, 1), (1, 1), (0, 0)))
        xcm = jnp.transpose(xp, (3, 0, 1, 2)).reshape(c, L)
        return jnp.pad(xcm, ((0, 8 - c), (0, Lpad - L)))

    def unplanes(p):
        x = p[:C, :L].reshape(C, N, Hp, Wp)
        return jnp.transpose(x, (1, 2, 3, 0))[:, 1:H + 1, 1:W + 1, :]

    z8   = planes(Zk)
    xk8  = planes(Xk)
    ysub = inv_n * planes(y)                                 # rows 0..3 = (2/n)*y
    dy8  = planes(jnp.concatenate([Xk - X0, y], axis=-1))    # rows 0..3 = d, 4..7 = y

    # interior-pixel mask (also zeroes the lane-padding tail)
    hh = jnp.arange(Hp)
    ww = jnp.arange(Wp)
    m2d = ((hh[:, None] >= 1) & (hh[:, None] <= H)
           & (ww[None, :] >= 1) & (ww[None, :] <= W)).astype(jnp.float32)
    mask = jnp.tile(m2d.reshape(-1), (N,))
    mask = jnp.pad(mask, (0, Lpad - L)).reshape(1, Lpad)

    def to_cols(w):
        # (R,3,3,S) -> (8, 72), column = tap*8 + channel
        R, S = w.shape[0], w.shape[3]
        w = jnp.pad(w, ((0, 8 - R), (0, 0), (0, 0), (0, 8 - S)))
        return w.reshape(8, 72)

    # residual conv (inv_n folded in):
    #   rows 0-3 -> dL/dyk  uses (1+g)A - gA0 ; rows 4-7 -> dL/dyinit uses g(A0-A)
    B1 = (1.0 + GAMMA) * A - GAMMA * A0
    B2 = GAMMA * (A0 - A)
    w_res = inv_n * to_cols(
        jnp.transpose(jnp.concatenate([B1, B2], axis=3), (3, 0, 1, 2)))
    # transposed conv for dL/dZ: row ci, col tap*8 + [rA co | rA0 co]
    w_bwd = to_cols(jnp.transpose(jnp.concatenate([A, A0], axis=3), (2, 0, 1, 3)))
    # R step: row co, col tap*8 + [d ci (WR) | y ci (WY)]; fold eta into the slab
    w_r = eta[0] * to_cols(
        jnp.transpose(jnp.concatenate([WR, WY], axis=2), (3, 0, 1, 2)))
    wpack = jnp.stack([w_res, w_bwd, w_r], axis=0)           # (3, 8, 72)

    # current A in the gA layout: (tap*8+ci, co), zero padded
    af = jnp.pad(A, ((0, 0), (0, 0), (0, 8 - C), (0, 8 - C))).reshape(72, 8)

    kernel = _make_kernel(N, H, W, C, Lpad)
    zk8_new, xk8_new, a_new = pl.pallas_call(
        kernel,
        out_shape=(jax.ShapeDtypeStruct((8, Lpad), jnp.float32),   # Zk_new planes
                   jax.ShapeDtypeStruct((8, Lpad), jnp.float32),   # Xk_new planes
                   jax.ShapeDtypeStruct((72, 8), jnp.float32)),    # A_new slab
        in_specs=[VMEM_SPEC] * 7,
        out_specs=(VMEM_SPEC, VMEM_SPEC, VMEM_SPEC),
        compiler_params=pltpu.CompilerParams(vmem_limit_bytes=32 * 1024 * 1024),
    )(z8, xk8, dy8, ysub, mask, wpack, af)

    Xk_new = unplanes(xk8_new)
    Zk_new = unplanes(zk8_new)
    A_new = a_new.reshape(3, 3, 8, 8)[:, :, :C, :C]
    return Xk_new, Zk_new, A_new


# ---------------------------------------------------------------------------
if __name__ == "__main__":
    N, H, W, C, K = 2, 16, 16, 4, 3

    key = jax.random.PRNGKey(0)
    ks = jax.random.split(key, 8)
    Xk = 0.1 * jax.random.normal(ks[0], (N, H, W, C), jnp.float32)
    X0 = 0.1 * jax.random.normal(ks[1], (N, H, W, C), jnp.float32)
    Zk = 0.1 * jax.random.normal(ks[2], (N, H, W, C), jnp.float32)
    y  = 0.1 * jax.random.normal(ks[3], (N, H, W, C), jnp.float32)

    # fixed "blur" operator A0 (per-channel normalized Gaussian), HWIO
    g = jnp.array([[1., 2., 1.], [2., 4., 2.], [1., 2., 1.]], jnp.float32) / 16.0
    A0 = jnp.einsum('hw,io->hwio', g, jnp.eye(C, dtype=jnp.float32))
    # learnable netA kernel (deterministic init), and netR kernels
    A  = A0 + 0.01 * jax.random.normal(ks[4], (K, K, C, C), jnp.float32)
    WR = 0.05 * jax.random.normal(ks[5], (K, K, C, C), jnp.float32)
    WY = 0.05 * jax.random.normal(ks[6], (K, K, C, C), jnp.float32)
    eta = jnp.array([ETA], jnp.float32)

    fwd = jax.jit(deq_kth_iter_forward)
    Xk_new, Zk_new, A_new = fwd(Xk, y, Zk, X0, A0, A, WR, WY, eta)
    jax.block_until_ready((Xk_new, Zk_new, A_new))
    print("KERNEL_OK")
</pallas_src>

<mosaic_0001>
module attributes {stable_mosaic.version = 11 : i64} {
  func.func @kernel(%arg0: memref<8x768xf32, #tpu.memory_space<vmem>>, %arg1: memref<8x768xf32, #tpu.memory_space<vmem>>, %arg2: memref<8x768xf32, #tpu.memory_space<vmem>>, %arg3: memref<8x768xf32, #tpu.memory_space<vmem>>, %arg4: memref<1x768xf32, #tpu.memory_space<vmem>>, %arg5: memref<3x8x72xf32, #tpu.memory_space<vmem>>, %arg6: memref<72x8xf32, #tpu.memory_space<vmem>>, %arg7: memref<8x768xf32, #tpu.memory_space<vmem>>, %arg8: memref<8x768xf32, #tpu.memory_space<vmem>>, %arg9: memref<72x8xf32, #tpu.memory_space<vmem>>) attributes {dimension_semantics = [], scalar_prefetch = 0 : i64, scratch_operands = 0 : i64, tpu.core_type = #tpu.core_type<tc>} {
    %c0 = arith.constant 0 : index
    %c0_0 = arith.constant 0 : index
    %0 = vector.load %arg4[%c0, %c0_0] : memref<1x768xf32, #tpu.memory_space<vmem>>, vector<1x768xf32>
    %1 = vector.shape_cast %0 : vector<1x768xf32> to vector<1x768xf32>
    %2 = vector.broadcast %1 : vector<1x768xf32> to vector<8x768xf32>
    %c0_1 = arith.constant 0 : index
    %c0_2 = arith.constant 0 : index
    %3 = vector.load %arg0[%c0_1, %c0_2] : memref<8x768xf32, #tpu.memory_space<vmem>>, vector<8x768xf32>
    %c0_3 = arith.constant 0 : index
    %c0_4 = arith.constant 0 : index
    %4 = vector.load %arg3[%c0_3, %c0_4] : memref<8x768xf32, #tpu.memory_space<vmem>>, vector<8x768xf32>
    %c0_5 = arith.constant 0 : index
    %c0_6 = arith.constant 0 : index
    %c0_7 = arith.constant 0 : index
    %5 = vector.load %arg5[%c0_5, %c0_6, %c0_7] : memref<3x8x72xf32, #tpu.memory_space<vmem>>, vector<1x8x72xf32>
    %6 = vector.shape_cast %5 : vector<1x8x72xf32> to vector<8x72xf32>
    %c1 = arith.constant 1 : index
    %c0_8 = arith.constant 0 : index
    %c0_9 = arith.constant 0 : index
    %7 = vector.load %arg5[%c1, %c0_8, %c0_9] : memref<3x8x72xf32, #tpu.memory_space<vmem>>, vector<1x8x72xf32>
    %8 = vector.shape_cast %7 : vector<1x8x72xf32> to vector<8x72xf32>
    %c2 = arith.constant 2 : index
    %c0_10 = arith.constant 0 : index
    %c0_11 = arith.constant 0 : index
    %9 = vector.load %arg5[%c2, %c0_10, %c0_11] : memref<3x8x72xf32, #tpu.memory_space<vmem>>, vector<1x8x72xf32>
    %10 = vector.shape_cast %9 : vector<1x8x72xf32> to vector<8x72xf32>
    %c19_i32 = arith.constant 19 : i32
    %11 = tpu.dynamic_rotate %3 by %c19_i32 dim 1 : vector<8x768xf32>, i32 -> vector<8x768xf32>
    %c18_i32 = arith.constant 18 : i32
    %12 = tpu.dynamic_rotate %3 by %c18_i32 dim 1 : vector<8x768xf32>, i32 -> vector<8x768xf32>
    %c17_i32 = arith.constant 17 : i32
    %13 = tpu.dynamic_rotate %3 by %c17_i32 dim 1 : vector<8x768xf32>, i32 -> vector<8x768xf32>
    %c1_i32 = arith.constant 1 : i32
    %14 = tpu.dynamic_rotate %3 by %c1_i32 dim 1 : vector<8x768xf32>, i32 -> vector<8x768xf32>
    %c767_i32 = arith.constant 767 : i32
    %15 = tpu.dynamic_rotate %3 by %c767_i32 dim 1 : vector<8x768xf32>, i32 -> vector<8x768xf32>
    %c751_i32 = arith.constant 751 : i32
    %16 = tpu.dynamic_rotate %3 by %c751_i32 dim 1 : vector<8x768xf32>, i32 -> vector<8x768xf32>
    %c750_i32 = arith.constant 750 : i32
    %17 = tpu.dynamic_rotate %3 by %c750_i32 dim 1 : vector<8x768xf32>, i32 -> vector<8x768xf32>
    %c749_i32 = arith.constant 749 : i32
    %18 = tpu.dynamic_rotate %3 by %c749_i32 dim 1 : vector<8x768xf32>, i32 -> vector<8x768xf32>
    %19 = tpu.concatenate %11, %12, %13, %14, %3, %15, %16, %17, %18 in 0 : vector<8x768xf32>, vector<8x768xf32>, vector<8x768xf32>, vector<8x768xf32>, vector<8x768xf32>, vector<8x768xf32>, vector<8x768xf32>, vector<8x768xf32>, vector<8x768xf32> -> vector<72x768xf32>
    %cst = arith.constant dense<0.000000e+00> : vector<8x768xf32>
    %20 = tpu.matmul %6, %19, %cst {dimension_numbers = #tpu.dot_dimension_numbers<[1], [0], [0], [1], [0, 0, 1, 1], [], []>} : vector<8x72xf32>, vector<72x768xf32>, vector<8x768xf32> -> vector<8x768xf32>
    %21 = arith.subf %20, %4 : vector<8x768xf32>
    %22 = arith.mulf %2, %21 : vector<8x768xf32>
    %c749_i32_12 = arith.constant 749 : i32
    %23 = tpu.dynamic_rotate %22 by %c749_i32_12 dim 1 : vector<8x768xf32>, i32 -> vector<8x768xf32>
    %c750_i32_13 = arith.constant 750 : i32
    %24 = tpu.dynamic_rotate %22 by %c750_i32_13 dim 1 : vector<8x768xf32>, i32 -> vector<8x768xf32>
    %c751_i32_14 = arith.constant 751 : i32
    %25 = tpu.dynamic_rotate %22 by %c751_i32_14 dim 1 : vector<8x768xf32>, i32 -> vector<8x768xf32>
    %c767_i32_15 = arith.constant 767 : i32
    %26 = tpu.dynamic_rotate %22 by %c767_i32_15 dim 1 : vector<8x768xf32>, i32 -> vector<8x768xf32>
    %c1_i32_16 = arith.constant 1 : i32
    %27 = tpu.dynamic_rotate %22 by %c1_i32_16 dim 1 : vector<8x768xf32>, i32 -> vector<8x768xf32>
    %c17_i32_17 = arith.constant 17 : i32
    %28 = tpu.dynamic_rotate %22 by %c17_i32_17 dim 1 : vector<8x768xf32>, i32 -> vector<8x768xf32>
    %c18_i32_18 = arith.constant 18 : i32
    %29 = tpu.dynamic_rotate %22 by %c18_i32_18 dim 1 : vector<8x768xf32>, i32 -> vector<8x768xf32>
    %c19_i32_19 = arith.constant 19 : i32
    %30 = tpu.dynamic_rotate %22 by %c19_i32_19 dim 1 : vector<8x768xf32>, i32 -> vector<8x768xf32>
    %31 = tpu.concatenate %23, %24, %25, %26, %22, %27, %28, %29, %30 in 0 : vector<8x768xf32>, vector<8x768xf32>, vector<8x768xf32>, vector<8x768xf32>, vector<8x768xf32>, vector<8x768xf32>, vector<8x768xf32>, vector<8x768xf32>, vector<8x768xf32> -> vector<72x768xf32>
    %cst_20 = arith.constant dense<0.000000e+00> : vector<8x768xf32>
    %32 = tpu.matmul %8, %31, %cst_20 {dimension_numbers = #tpu.dot_dimension_numbers<[1], [0], [0], [1], [0, 0, 1, 1], [], []>} : vector<8x72xf32>, vector<72x768xf32>, vector<8x768xf32> -> vector<8x768xf32>
    %c0_21 = arith.constant 0 : index
    %c0_22 = arith.constant 0 : index
    %33 = vector.load %arg1[%c0_21, %c0_22] : memref<8x768xf32, #tpu.memory_space<vmem>>, vector<8x768xf32>
    %34 = arith.subf %3, %33 : vector<8x768xf32>
    %cst_23 = arith.constant 9.76562514E-5 : f32
    %35 = vector.broadcast %cst_23 : f32 to vector<8x768xf32>
    %36 = arith.mulf %35, %34 : vector<8x768xf32>
    %37 = arith.addf %32, %36 : vector<8x768xf32>
    %38 = arith.mulf %2, %37 : vector<8x768xf32>
    %39 = math.absf %38 : vector<8x768xf32>
    %cst_24 = arith.constant 9.99999993E-9 : f32
    %40 = vector.broadcast %cst_24 : f32 to vector<8x768xf32>
    %41 = arith.addf %39, %40 : vector<8x768xf32>
    %42 = tpu.reciprocal %41 {approx = true} : vector<8x768xf32> -> vector<8x768xf32>
    %43 = arith.mulf %38, %42 : vector<8x768xf32>
    %cst_25 = arith.constant 0.999899983 : f32
    %44 = vector.broadcast %cst_25 : f32 to vector<8x768xf32>
    %45 = arith.mulf %3, %44 : vector<8x768xf32>
    %cst_26 = arith.constant 0.00999999977 : f32
    %46 = vector.broadcast %cst_26 : f32 to vector<8x768xf32>
    %47 = arith.mulf %46, %43 : vector<8x768xf32>
    %48 = arith.subf %45, %47 : vector<8x768xf32>
    %c0_27 = arith.constant 0 : index
    %c0_28 = arith.constant 0 : index
    %49 = vector.load %arg7[%c0_27, %c0_28] : memref<8x768xf32, #tpu.memory_space<vmem>>, vector<8x768xf32>
    tpu.vector_store %arg7[%c0_27, %c0_28], %48 {strides = array<i32>} : memref<8x768xf32, #tpu.memory_space<vmem>>, vector<8x768xf32>,
    %c19_i32_29 = arith.constant 19 : i32
    %50 = tpu.dynamic_rotate %48 by %c19_i32_29 dim 1 : vector<8x768xf32>, i32 -> vector<8x768xf32>
    %c18_i32_30 = arith.constant 18 : i32
    %51 = tpu.dynamic_rotate %48 by %c18_i32_30 dim 1 : vector<8x768xf32>, i32 -> vector<8x768xf32>
    %c17_i32_31 = arith.constant 17 : i32
    %52 = tpu.dynamic_rotate %48 by %c17_i32_31 dim 1 : vector<8x768xf32>, i32 -> vector<8x768xf32>
    %c1_i32_32 = arith.constant 1 : i32
    %53 = tpu.dynamic_rotate %48 by %c1_i32_32 dim 1 : vector<8x768xf32>, i32 -> vector<8x768xf32>
    %c767_i32_33 = arith.constant 767 : i32
    %54 = tpu.dynamic_rotate %48 by %c767_i32_33 dim 1 : vector<8x768xf32>, i32 -> vector<8x768xf32>
    %c751_i32_34 = arith.constant 751 : i32
    %55 = tpu.dynamic_rotate %48 by %c751_i32_34 dim 1 : vector<8x768xf32>, i32 -> vector<8x768xf32>
    %c750_i32_35 = arith.constant 750 : i32
    %56 = tpu.dynamic_rotate %48 by %c750_i32_35 dim 1 : vector<8x768xf32>, i32 -> vector<8x768xf32>
    %c749_i32_36 = arith.constant 749 : i32
    %57 = tpu.dynamic_rotate %48 by %c749_i32_36 dim 1 : vector<8x768xf32>, i32 -> vector<8x768xf32>
    %58 = tpu.concatenate %50, %51, %52, %53, %48, %54, %55, %56, %57 in 0 : vector<8x768xf32>, vector<8x768xf32>, vector<8x768xf32>, vector<8x768xf32>, vector<8x768xf32>, vector<8x768xf32>, vector<8x768xf32>, vector<8x768xf32>, vector<8x768xf32> -> vector<72x768xf32>
    %cst_37 = arith.constant dense<0.000000e+00> : vector<8x768xf32>
    %59 = tpu.matmul %6, %58, %cst_37 {dimension_numbers = #tpu.dot_dimension_numbers<[1], [0], [0], [1], [0, 0, 1, 1], [], []>} : vector<8x72xf32>, vector<72x768xf32>, vector<8x768xf32> -> vector<8x768xf32>
    %60 = arith.subf %59, %4 : vector<8x768xf32>
    %61 = arith.mulf %2, %60 : vector<8x768xf32>
    %cst_38 = arith.constant dense<0.000000e+00> : vector<72x8xf32>
    %62 = tpu.matmul %58, %61, %cst_38 {dimension_numbers = #tpu.dot_dimension_numbers<[1], [1], [0], [0], [0, 0, 1, 0], [], []>} : vector<72x768xf32>, vector<8x768xf32>, vector<72x8xf32> -> vector<72x8xf32>
    %63 = math.absf %62 : vector<72x8xf32>
    %cst_39 = arith.constant 9.99999993E-9 : f32
    %64 = vector.broadcast %cst_39 : f32 to vector<72x8xf32>
    %65 = arith.addf %63, %64 : vector<72x8xf32>
    %66 = tpu.reciprocal %65 {approx = true} : vector<72x8xf32> -> vector<72x8xf32>
    %67 = arith.mulf %62, %66 : vector<72x8xf32>
    %c0_40 = arith.constant 0 : index
    %c0_41 = arith.constant 0 : index
    %68 = vector.load %arg6[%c0_40, %c0_41] : memref<72x8xf32, #tpu.memory_space<vmem>>, vector<72x8xf32>
    %cst_42 = arith.constant 0.999989986 : f32
    %69 = vector.broadcast %cst_42 : f32 to vector<72x8xf32>
    %70 = arith.mulf %68, %69 : vector<72x8xf32>
    %cst_43 = arith.constant 1.000000e-03 : f32
    %71 = vector.broadcast %cst_43 : f32 to vector<72x8xf32>
    %72 = arith.mulf %71, %67 : vector<72x8xf32>
    %73 = arith.subf %70, %72 : vector<72x8xf32>
    %c0_44 = arith.constant 0 : index
    %c0_45 = arith.constant 0 : index
    %74 = vector.load %arg9[%c0_44, %c0_45] : memref<72x8xf32, #tpu.memory_space<vmem>>, vector<72x8xf32>
    tpu.vector_store %arg9[%c0_44, %c0_45], %73 {strides = array<i32>} : memref<72x8xf32, #tpu.memory_space<vmem>>, vector<72x8xf32>,
    %c0_46 = arith.constant 0 : index
    %c0_47 = arith.constant 0 : index
    %75 = vector.load %arg2[%c0_46, %c0_47] : memref<8x768xf32, #tpu.memory_space<vmem>>, vector<8x768xf32>
    %c19_i32_48 = arith.constant 19 : i32
    %76 = tpu.dynamic_rotate %75 by %c19_i32_48 dim 1 : vector<8x768xf32>, i32 -> vector<8x768xf32>
    %c18_i32_49 = arith.constant 18 : i32
    %77 = tpu.dynamic_rotate %75 by %c18_i32_49 dim 1 : vector<8x768xf32>, i32 -> vector<8x768xf32>
    %c17_i32_50 = arith.constant 17 : i32
    %78 = tpu.dynamic_rotate %75 by %c17_i32_50 dim 1 : vector<8x768xf32>, i32 -> vector<8x768xf32>
    %c1_i32_51 = arith.constant 1 : i32
    %79 = tpu.dynamic_rotate %75 by %c1_i32_51 dim 1 : vector<8x768xf32>, i32 -> vector<8x768xf32>
    %c767_i32_52 = arith.constant 767 : i32
    %80 = tpu.dynamic_rotate %75 by %c767_i32_52 dim 1 : vector<8x768xf32>, i32 -> vector<8x768xf32>
    %c751_i32_53 = arith.constant 751 : i32
    %81 = tpu.dynamic_rotate %75 by %c751_i32_53 dim 1 : vector<8x768xf32>, i32 -> vector<8x768xf32>
    %c750_i32_54 = arith.constant 750 : i32
    %82 = tpu.dynamic_rotate %75 by %c750_i32_54 dim 1 : vector<8x768xf32>, i32 -> vector<8x768xf32>
    %c749_i32_55 = arith.constant 749 : i32
    %83 = tpu.dynamic_rotate %75 by %c749_i32_55 dim 1 : vector<8x768xf32>, i32 -> vector<8x768xf32>
    %84 = tpu.concatenate %76, %77, %78, %79, %75, %80, %81, %82, %83 in 0 : vector<8x768xf32>, vector<8x768xf32>, vector<8x768xf32>, vector<8x768xf32>, vector<8x768xf32>, vector<8x768xf32>, vector<8x768xf32>, vector<8x768xf32>, vector<8x768xf32> -> vector<72x768xf32>
    %cst_56 = arith.constant dense<0.000000e+00> : vector<8x768xf32>
    %85 = tpu.matmul %10, %84, %cst_56 {dimension_numbers = #tpu.dot_dimension_numbers<[1], [0], [0], [1], [0, 0, 1, 1], [], []>} : vector<8x72xf32>, vector<72x768xf32>, vector<8x768xf32> -> vector<8x768xf32>
    %86 = arith.addf %48, %85 : vector<8x768xf32>
    %c0_57 = arith.constant 0 : index
    %c0_58 = arith.constant 0 : index
    %87 = vector.load %arg8[%c0_57, %c0_58] : memref<8x768xf32, #tpu.memory_space<vmem>>, vector<8x768xf32>
    tpu.vector_store %arg8[%c0_57, %c0_58], %86 {strides = array<i32>} : memref<8x768xf32, #tpu.memory_space<vmem>>, vector<8x768xf32>,
    return
  }
}

</mosaic_0001>

<bundles_post_ra>
// kernel: tile.6
= control target key start
LH: loop header
LB: loop body
LE: loop exit
PB: predicated region body
PF: predicated region fallthrough
CT: control target
= control target key end

     0   :  { %s46_s0 = inlined_call_operand.vmem [shape: f32[324], index: 0, kind: input, shape index: {}]   ;;  %s47_s1 = inlined_call_operand.vmem [shape: f32[2,324], index: 1, kind: output, shape index: {}]  }
   0x1   :  { %v4_v0 = vld [vmem:[%s46_s0] ss:$0 sm:$0xff]  ;;  %v14_v1 = vld [vmem:[%s46_s0 + $0x1] ss:$0 sm:$0xff]  ;;  %v16_v2 = vld [vmem:[%s46_s0 + $0x2] ss:$0 sm:$0xff] }
   0x2   :  { %5 = vst [vmem:[%s47_s1] sm:$0x3] %v4_v0  ;;  %15 = vst [vmem:[%s47_s1 + $0x2] sm:$0x3] %v14_v1 }
   0x3   :  { %17 = vst [vmem:[%s47_s1 + $0x4] sm:$0x3] %v16_v2 }

// kernel: tile.7
= control target key start
LH: loop header
LB: loop body
LE: loop exit
PB: predicated region body
PF: predicated region fallthrough
CT: control target
= control target key end

     0   :  { %vm27_vm0 = vcmask 490496   ;;  %vm17_vm1 = vcmask 556032   ;;  %s38_s12 = smov 3  ;;  %s53_s13 = smov 68   ;;  %vm31_vm2 = vcmask 64512   ;;  %vm34_vm3 = vcmask 1048096   ;;  %s90_s0 = inlined_call_operand.vmem [shape: f32[2,324], index: 0, kind: input, shape index: {}]   ;;  %s91_s1 = inlined_call_operand.vmem [shape: f32[648], index: 1, kind: output, shape index: {}]  }
   0x1   :  { %v46_v0 = vld [vmem:[%s90_s0 + $0x4] sm:$0x3]  ;;  %v47_v1 = vld [vmem:[%s90_s0 + $0x2] sm:$0x3]  ;;  %v13_v2 = vld [vmem:[%s90_s0] sm:$0x3] }
   0x2   :  { %8 = vst [vmem:[#allocation0 + $0x10] sm:$0x3] %v46_v0  ;;  %12 = vst [vmem:[#allocation0 + $0x8] sm:$0x3] %v47_v1  ;;  %s20_s0 = smov 3 }
   0x3   :  { %14 = vst [vmem:[#allocation0] sm:$0x3] %v13_v2 }
   0x9   :  { %v24_v3 = vld [vmem:[#allocation0 + $0x11] sm:$0x1]   ;;  %v16_v7 = vld [vmem:[#allocation0 + $0x10] sm:$0x1]  }
   0xa   :  { %v26_v4 = vld [vmem:[#allocation0 + $0x1] ss:$8 sm:$0x7]   ;;  %v21_v6 = vld [vmem:[#allocation0] ss:$8 sm:%s20_s0]  }
   0xb   :  { %v28_v5 = vsel %vm27_vm0, %v26_v4, %v24_v3  ;;  %22 = vst [vmem:[%s91_s1] sm:$0x3] %v21_v6   ;;  %48 = vst.msk [vmem:[%s91_s1 + $0x2] sm:$0x1] %vm17_vm1, %v16_v7   ;;  %v39_v8 = vld [vmem:[#allocation0 + $0x1] ss:$8 sm:%s38_s12]  }
   0xc   :  { %29 = vrot.lane.b32.xlu0 %v28_v5, %s53_s13 }
  0x10   :  { %40 = vrot.lane.b32.xlu0 %v39_v8, %s53_s13 }
  0x7e   :  { %v30_v9 = vpop.permute.xlu0 %29  }
  0x7f   :  { %49 = vst.msk [vmem:[%s91_s1 + $0x5] sm:$0x1] %vm31_vm2, %v30_v9  }
  0x80   :  { %50 = vst.msk [vmem:[%s91_s1 + $0x2] sm:$0x7] %vm34_vm3, %v30_v9  }
  0x82   :  { %v41_v10 = vpop.permute.xlu0 %40  }
  0x83   :  { %51 = vst.msk [vmem:[%s91_s1 + $0x3] sm:$0x3] %vm17_vm1, %v41_v10  }

// kernel: sub.3
= control target key start
LH: loop header
LB: loop body
LE: loop exit
PB: predicated region body
PF: predicated region fallthrough
CT: control target
= control target key end

     0   :  { %s716_s0 = inlined_call_operand.vmem [shape: f32[2,16,16,4], index: 0, kind: input, shape index: {}]   ;;  %s717_s1 = inlined_call_operand.vmem [shape: f32[2,16,16,4], index: 1, kind: input, shape index: {}]   ;;  %s718_s2 = inlined_call_operand.vmem [shape: f32[2,16,16,4], index: 2, kind: output, shape index: {}]  }
   0x1   :  { %v3_v0 = vld [vmem:[%s716_s0] sm:$0xf]  ;;  %v323_v5 = vld [vmem:[%s716_s0 + $0x4] sm:$0xf]  ;;  %v329_v11 = vld [vmem:[%s716_s0 + $0x8] sm:$0xf] }
   0x2   :  { %v4_v1 = vld [vmem:[%s717_s1] sm:$0xf]  ;;  %v324_v6 = vld [vmem:[%s717_s1 + $0x4] sm:$0xf]  ;;  %v330_v13 = vld [vmem:[%s717_s1 + $0x8] sm:$0xf] }
   0x3   :  { %v320_v2 = vld [vmem:[%s716_s0 + $0x40] sm:$0xf]  ;;  %v7_v3 = vsub.f32 %v3_v0, %v4_v1  ;;  %v26_v8 = vsub.f32 %v323_v5, %v324_v6  ;;  %v326_v9 = vld [vmem:[%s716_s0 + $0x44] sm:$0xf]  ;;  %v332_v14 = vld [vmem:[%s716_s0 + $0x48] sm:$0xf]  ;;  %v46_v16 = vsub.f32 %v329_v11, %v330_v13 }
   0x4   :  { %v321_v4 = vld [vmem:[%s717_s1 + $0x40] sm:$0xf]  ;;  %v327_v10 = vld [vmem:[%s717_s1 + $0x44] sm:$0xf]  ;;  %v333_v15 = vld [vmem:[%s717_s1 + $0x48] sm:$0xf] }
   0x5   :  { %v16_v7 = vsub.f32 %v320_v2, %v321_v4  ;;  %9 = vst [vmem:[%s718_s2] sm:$0xf] %v7_v3  ;;  %v36_v12 = vsub.f32 %v326_v9, %v327_v10  ;;  %325 = vst [vmem:[%s718_s2 + $0x4] sm:$0xf] %v26_v8  ;;  %v56_v17 = vsub.f32 %v332_v14, %v333_v15  ;;  %v335_v18 = vld [vmem:[%s716_s0 + $0xc] sm:$0xf] }
   0x6   :  { %v336_v19 = vld [vmem:[%s717_s1 + $0xc] sm:$0xf]  ;;  %v341_v23 = vld [vmem:[%s716_s0 + $0x10] sm:$0xf]  ;;  %331 = vst [vmem:[%s718_s2 + $0x8] sm:$0xf] %v46_v16 }
   0x7   :  { %322 = vst [vmem:[%s718_s2 + $0x40] sm:$0xf] %v16_v7  ;;  %v338_v20 = vld [vmem:[%s716_s0 + $0x4c] sm:$0xf]  ;;  %328 = vst [vmem:[%s718_s2 + $0x44] sm:$0xf] %v36_v12  ;;  %v66_v21 = vsub.f32 %v335_v18, %v336_v19 }
   0x8   :  { %v339_v22 = vld [vmem:[%s717_s1 + $0x4c] sm:$0xf]  ;;  %v342_v24 = vld [vmem:[%s717_s1 + $0x10] sm:$0xf]  ;;  %334 = vst [vmem:[%s718_s2 + $0x48] sm:$0xf] %v56_v17 }
   0x9   :  { %v76_v25 = vsub.f32 %v338_v20, %v339_v22  ;;  %v86_v26 = vsub.f32 %v341_v23, %v342_v24  ;;  %v344_v27 = vld [vmem:[%s716_s0 + $0x50] sm:$0xf]  ;;  %v347_v29 = vld [vmem:[%s716_s0 + $0x14] sm:$0xf]  ;;  %337 = vst [vmem:[%s718_s2 + $0xc] sm:$0xf] %v66_v21 }
   0xa   :  { %v345_v28 = vld [vmem:[%s717_s1 + $0x50] sm:$0xf]  ;;  %v348_v31 = vld [vmem:[%s717_s1 + $0x14] sm:$0xf]  ;;  %v353_v36 = vld [vmem:[%s716_s0 + $0x18] sm:$0xf] }
   0xb   :  { %v96_v30 = vsub.f32 %v344_v27, %v345_v28  ;;  %v350_v32 = vld [vmem:[%s716_s0 + $0x54] sm:$0xf]  ;;  %340 = vst [vmem:[%s718_s2 + $0x4c] sm:$0xf] %v76_v25  ;;  %343 = vst [vmem:[%s718_s2 + $0x10] sm:$0xf] %v86_v26  ;;  %v106_v34 = vsub.f32 %v347_v29, %v348_v31 }
   0xc   :  { %v351_v33 = vld [vmem:[%s717_s1 + $0x54] sm:$0xf]  ;;  %v354_v37 = vld [vmem:[%s717_s1 + $0x18] sm:$0xf]  ;;  %v359_v41 = vld [vmem:[%s716_s0 + $0x1c] sm:$0xf] }
   0xd   :  { %v116_v35 = vsub.f32 %v350_v32, %v351_v33  ;;  %v356_v38 = vld [vmem:[%s716_s0 + $0x58] sm:$0xf]  ;;  %346 = vst [vmem:[%s718_s2 + $0x50] sm:$0xf] %v96_v30  ;;  %v126_v39 = vsub.f32 %v353_v36, %v354_v37  ;;  %v360_v42 = vld [vmem:[%s717_s1 + $0x1c] sm:$0xf] }
   0xe   :  { %v357_v40 = vld [vmem:[%s717_s1 + $0x58] sm:$0xf]  ;;  %349 = vst [vmem:[%s718_s2 + $0x14] sm:$0xf] %v106_v34  ;;  %v146_v44 = vsub.f32 %v359_v41, %v360_v42  ;;  %v362_v45 = vld [vmem:[%s716_s0 + $0x5c] sm:$0xf] }
   0xf   :  { %352 = vst [vmem:[%s718_s2 + $0x54] sm:$0xf] %v116_v35  ;;  %v136_v43 = vsub.f32 %v356_v38, %v357_v40  ;;  %v363_v46 = vld [vmem:[%s717_s1 + $0x5c] sm:$0xf]  ;;  %v365_v47 = vld [vmem:[%s716_s0 + $0x20] sm:$0xf] }
  0x10   :  { %355 = vst [vmem:[%s718_s2 + $0x18] sm:$0xf] %v126_v39  ;;  %v156_v48 = vsub.f32 %v362_v45, %v363_v46  ;;  %v366_v49 = vld [vmem:[%s717_s1 + $0x20] sm:$0xf]  ;;  %361 = vst [vmem:[%s718_s2 + $0x1c] sm:$0xf] %v146_v44 }
  0x11   :  { %v368_v50 = vld [vmem:[%s716_s0 + $0x60] sm:$0xf]  ;;  %358 = vst [vmem:[%s718_s2 + $0x58] sm:$0xf] %v136_v43  ;;  %v166_v52 = vsub.f32 %v365_v47, %v366_v49  ;;  %v371_v54 = vld [vmem:[%s716_s0 + $0x24] sm:$0xf] }
  0x12   :  { %v369_v51 = vld [vmem:[%s717_s1 + $0x60] sm:$0xf]  ;;  %v372_v55 = vld [vmem:[%s717_s1 + $0x24] sm:$0xf]  ;;  %364 = vst [vmem:[%s718_s2 + $0x5c] sm:$0xf] %v156_v48 }
  0x13   :  { %v176_v53 = vsub.f32 %v368_v50, %v369_v51  ;;  %v374_v56 = vld [vmem:[%s716_s0 + $0x64] sm:$0xf]  ;;  %v186_v57 = vsub.f32 %v371_v54, %v372_v55  ;;  %v377_v59 = vld [vmem:[%s716_s0 + $0x28] sm:$0xf]  ;;  %367 = vst [vmem:[%s718_s2 + $0x20] sm:$0xf] %v166_v52 }
  0x14   :  { %v375_v58 = vld [vmem:[%s717_s1 + $0x64] sm:$0xf]  ;;  %v378_v60 = vld [vmem:[%s717_s1 + $0x28] sm:$0xf]  ;;  %v383_v1 = vld [vmem:[%s716_s0 + $0x2c] sm:$0xf] }
  0x15   :  { %370 = vst [vmem:[%s718_s2 + $0x60] sm:$0xf] %v176_v53  ;;  %v196_v61 = vsub.f32 %v374_v56, %v375_v58  ;;  %v206_v62 = vsub.f32 %v377_v59, %v378_v60  ;;  %v380_v63 = vld [vmem:[%s716_s0 + $0x68] sm:$0xf]  ;;  %373 = vst [vmem:[%s718_s2 + $0x24] sm:$0xf] %v186_v57 }
  0x16   :  { %v381_v0 = vld [vmem:[%s717_s1 + $0x68] sm:$0xf]  ;;  %v384_v3 = vld [vmem:[%s717_s1 + $0x2c] sm:$0xf]  ;;  %v389_v8 = vld [vmem:[%s716_s0 + $0x30] sm:$0xf] }
  0x17   :  { %v216_v2 = vsub.f32 %v380_v63, %v381_v0  ;;  %v386_v4 = vld [vmem:[%s716_s0 + $0x6c] sm:$0xf]  ;;  %376 = vst [vmem:[%s718_s2 + $0x64] sm:$0xf] %v196_v61  ;;  %379 = vst [vmem:[%s718_s2 + $0x28] sm:$0xf] %v206_v62  ;;  %v226_v6 = vsub.f32 %v383_v1, %v384_v3 }
  0x18   :  { %v387_v5 = vld [vmem:[%s717_s1 + $0x6c] sm:$0xf]  ;;  %v390_v9 = vld [vmem:[%s717_s1 + $0x30] sm:$0xf]  ;;  %v395_v13 = vld [vmem:[%s716_s0 + $0x34] sm:$0xf] }
  0x19   :  { %v236_v7 = vsub.f32 %v386_v4, %v387_v5  ;;  %v392_v10 = vld [vmem:[%s716_s0 + $0x70] sm:$0xf]  ;;  %382 = vst [vmem:[%s718_s2 + $0x68] sm:$0xf] %v216_v2  ;;  %v246_v11 = vsub.f32 %v389_v8, %v390_v9  ;;  %v396_v14 = vld [vmem:[%s717_s1 + $0x34] sm:$0xf] }
  0x1a   :  { %v393_v12 = vld [vmem:[%s717_s1 + $0x70] sm:$0xf]  ;;  %385 = vst [vmem:[%s718_s2 + $0x2c] sm:$0xf] %v226_v6  ;;  %v266_v16 = vsub.f32 %v395_v13, %v396_v14  ;;  %v398_v17 = vld [vmem:[%s716_s0 + $0x74] sm:$0xf] }
  0x1b   :  { %388 = vst [vmem:[%s718_s2 + $0x6c] sm:$0xf] %v236_v7  ;;  %v256_v15 = vsub.f32 %v392_v10, %v393_v12  ;;  %v399_v18 = vld [vmem:[%s717_s1 + $0x74] sm:$0xf]  ;;  %v401_v19 = vld [vmem:[%s716_s0 + $0x38] sm:$0xf] }
  0x1c   :  { %391 = vst [vmem:[%s718_s2 + $0x30] sm:$0xf] %v246_v11  ;;  %v276_v20 = vsub.f32 %v398_v17, %v399_v18  ;;  %v402_v21 = vld [vmem:[%s717_s1 + $0x38] sm:$0xf]  ;;  %397 = vst [vmem:[%s718_s2 + $0x34] sm:$0xf] %v266_v16 }
  0x1d   :  { %v404_v22 = vld [vmem:[%s716_s0 + $0x78] sm:$0xf]  ;;  %394 = vst [vmem:[%s718_s2 + $0x70] sm:$0xf] %v256_v15  ;;  %v286_v24 = vsub.f32 %v401_v19, %v402_v21  ;;  %v407_v26 = vld [vmem:[%s716_s0 + $0x3c] sm:$0xf] }
  0x1e   :  { %v405_v23 = vld [vmem:[%s717_s1 + $0x78] sm:$0xf]  ;;  %v408_v27 = vld [vmem:[%s717_s1 + $0x3c] sm:$0xf]  ;;  %400 = vst [vmem:[%s718_s2 + $0x74] sm:$0xf] %v276_v20 }
  0x1f   :  { %v296_v25 = vsub.f32 %v404_v22, %v405_v23  ;;  %v410_v28 = vld [vmem:[%s716_s0 + $0x7c] sm:$0xf]  ;;  %v306_v29 = vsub.f32 %v407_v26, %v408_v27  ;;  %403 = vst [vmem:[%s718_s2 + $0x38] sm:$0xf] %v286_v24 }
  0x20   :  { %v411_v30 = vld [vmem:[%s717_s1 + $0x7c] sm:$0xf] }
  0x21   :  { %406 = vst [vmem:[%s718_s2 + $0x78] sm:$0xf] %v296_v25  ;;  %v316_v31 = vsub.f32 %v410_v28, %v411_v30  ;;  %409 = vst [vmem:[%s718_s2 + $0x3c] sm:$0xf] %v306_v29 }
  0x23   :  { %412 = vst [vmem:[%s718_s2 + $0x7c] sm:$0xf] %v316_v31 }

// kernel: deq_kth_iter_forward.1
= control target key start
LH: loop header
LB: loop body
LE: loop exit
PB: predicated region body
PF: predicated region fallthrough
CT: control target
= control target key end

     0   :  { %s2680_s17 = smov 19   ;;  %s2681_s18 = smov 18   ;;  %v4429_v11 = vmov 0.0   ;;  %v31_v12 = vlaneseq  ;;  %vm232_vm8 = vcmask 588800   ;;  %vm1664_vm9 = vcmask 64512   ;;  %s4414_s0 = inlined_call_operand.vmem [shape: f32[8,768], index: 0, kind: input, shape index: {}]   ;;  %s4415_s5 = inlined_call_operand.vmem [shape: f32[3,8,72], index: 5, kind: input, shape index: {}]   ;;  %s4416_s3 = inlined_call_operand.vmem [shape: f32[8,768], index: 3, kind: input, shape index: {}]   ;;  %s4417_s4 = inlined_call_operand.vmem [shape: f32[1,768], index: 4, kind: input, shape index: {}]   ;;  %s4418_s1 = inlined_call_operand.vmem [shape: f32[8,768], index: 1, kind: input, shape index: {}]   ;;  %s4419_s7 = inlined_call_operand.vmem [shape: f32[8,768], index: 7, kind: output, shape index: {0}]   ;;  %s4420_s2 = inlined_call_operand.vmem [shape: f32[8,768], index: 2, kind: input, shape index: {}]   ;;  %s4421_s8 = inlined_call_operand.vmem [shape: f32[8,768], index: 8, kind: output, shape index: {1}]   ;;  %s4422_s6 = inlined_call_operand.vmem [shape: f32[72,8], index: 6, kind: input, shape index: {}]   ;;  %s4423_s9 = inlined_call_operand.vmem [shape: f32[72,8], index: 9, kind: output, shape index: {2}]  }
   0x1   :  { %v2742_v0 = vld [vmem:[%s4414_s0 + $0x10] sm:$0xff]  ;;  %v2747_v1 = vld [vmem:[%s4414_s0 + $0x28] sm:$0xff]  ;;  %v2752_v2 = vld [vmem:[%s4414_s0] sm:$0xff]  ;;  %s2682_s19 = smov 1   ;;  %s2683_s20 = smov 17   ;;  %300 = vmatprep.mubr.f32.mxu0 %v4429_v11  ;;  %371 = vmatprep.mubr.f32.mxu1 %v4429_v11 }
   0x2   :  { %v2321_v3 = vpack.i.bf16 %v2742_v0, %v2747_v1  ;;  %v2759_v4 = vld [vmem:[%s4414_s0 + $0x8] sm:$0xff]  ;;  %v2772_v6 = vld [vmem:[%s4414_s0 + $0x18] sm:$0xff]  ;;  %v2783_v9 = vld [vmem:[%s4414_s0 + $0x20] sm:$0xff]  ;;  %s2684_s25 = smov 127   ;;  %s2685_s26 = smov 110   ;;  %v2828_v15 = vand.u32 127, %v31_v12 }
   0x3   :  { %v2311_v5 = vpack.i.bf16 %v2759_v4, %v2752_v2  ;;  %v2356_v7 = vpack.i.bf16 %v2772_v6, %v2752_v2  ;;  %v2351_v8 = vpack.i.bf16 %v2742_v0, %v2759_v4  ;;  %v2366_v10 = vpack.i.bf16 %v2783_v9, %v2772_v6  ;;  %s2686_s27 = smov 111   ;;  %s2688_s28 = smov 109  }
   0x4   :  { %2322 = vrot.lane.b32.xlu1 %v2321_v3, %s2680_s17  ;;  %vm92_vm0 = vcmp.lt.s32.totalorder %v2828_v15, 19  ;;  %vm111_vm1 = vcmp.lt.s32.totalorder %v2828_v15, 18  ;;  %vm130_vm2 = vcmp.lt.s32.totalorder %v2828_v15, 17  ;;  %vm149_vm3 = vcmp.lt.s32.totalorder %v2828_v15, 1 }
   0x5   :  { %2312 = vrot.lane.b32.xlu0 %v2311_v5, %s2680_s17  ;;  %vm168_vm4 = vcmp.lt.s32.totalorder %v2828_v15, 127  ;;  %vm206_vm5 = vcmp.lt.s32.totalorder %v2828_v15, 110  ;;  %vm187_vm6 = vcmp.lt.s32.totalorder %v2828_v15, 111  ;;  %vm225_vm7 = vcmp.lt.s32.totalorder %v2828_v15, 109 }
   0x8   :  { %2327 = vrot.lane.b32.xlu1 %v2321_v3, %s2681_s18 }
   0x9   :  { %2317 = vrot.lane.b32.xlu0 %v2311_v5, %s2681_s18 }
   0xc   :  { %2337 = vrot.lane.b32.xlu1 %v2311_v5, %s2682_s19 }
   0xd   :  { %2332 = vrot.lane.b32.xlu0 %v2311_v5, %s2683_s20 }
  0x10   :  { %2347 = vrot.lane.b32.xlu1 %v2321_v3, %s2682_s19 }
  0x11   :  { %2342 = vrot.lane.b32.xlu0 %v2321_v3, %s2683_s20 }
  0x14   :  { %2357 = vrot.lane.b32.xlu1 %v2356_v7, %s2684_s25 }
  0x15   :  { %2352 = vrot.lane.b32.xlu0 %v2351_v8, %s2684_s25 }
  0x18   :  { %2367 = vrot.lane.b32.xlu1 %v2366_v10, %s2681_s18 }
  0x19   :  { %2362 = vrot.lane.b32.xlu0 %v2366_v10, %s2680_s17 }
  0x1c   :  { %2377 = vrot.lane.b32.xlu1 %v2351_v8, %s2685_s26 }
  0x1d   :  { %2372 = vrot.lane.b32.xlu0 %v2351_v8, %s2686_s27 }
  0x20   :  { %194 = vrot.lane.b32.xlu1 %v2752_v2, %s2685_s26 }
  0x21   :  { %2382 = vrot.lane.b32.xlu0 %v2356_v7, %s2686_s27 }
  0x24   :  { %2392 = vrot.lane.b32.xlu1 %v2366_v10, %s2682_s19 }
  0x25   :  { %2387 = vrot.lane.b32.xlu0 %v2366_v10, %s2683_s20 }
  0x28   :  { %215 = vrot.lane.b32.xlu1 %v2759_v4, %s2688_s28 }
  0x29   :  { %164 = vrot.lane.b32.xlu0 %v2783_v9, %s2684_s25 }
  0x2c   :  { %213 = vrot.lane.b32.xlu1 %v2752_v2, %s2688_s28 }
  0x2d   :  { %217 = vrot.lane.b32.xlu0 %v2742_v0, %s2688_s28 }
  0x30   :  { %2397 = vrot.lane.b32.xlu1 %v2366_v10, %s2685_s26 }
  0x31   :  { %183 = vrot.lane.b32.xlu0 %v2783_v9, %s2686_s27 }
  0x34   :  { %219 = vrot.lane.b32.xlu1 %v2772_v6, %s2688_s28 }
  0x35   :  { %166 = vrot.lane.b32.xlu0 %v2747_v1, %s2684_s25 }
  0x38   :  { %185 = vrot.lane.b32.xlu1 %v2747_v1, %s2686_s27 }
  0x39   :  { %221 = vrot.lane.b32.xlu0 %v2783_v9, %s2688_s28 }
  0x3c   :  { %223 = vrot.lane.b32.xlu1 %v2747_v1, %s2688_s28 }
  0x3d   :  { %204 = vrot.lane.b32.xlu0 %v2747_v1, %s2685_s26 }
  0x76   :  { %v2823_v13 = vpop.permute.xlu1 %2322 }
  0x77   :  { %v2825_v14 = vpop.permute.xlu0 %2312  ;;  %v2324_v16 = vunpack.i.l.bf16 %v2823_v13  ;;  %v2325_v55 = vunpack.i.h.bf16 %v2823_v13 }
  0x78   :  { %v2315_v17 = vunpack.i.h.bf16 %v2825_v14  ;;  %v2314_v18 = vunpack.i.l.bf16 %v2825_v14 }
  0x7a   :  { %v2833_v19 = vpop.permute.xlu1 %2327  ;;  %v97_v25 = vsel %vm92_vm0, %v2314_v18, %v2315_v17  ;;  %v98_v27 = vsel %vm92_vm0, %v2324_v16, %v2314_v18  ;;  %v96_v8 = vsel %vm92_vm0, %v2315_v17, %v2325_v55 }
  0x7b   :  { %v2329_v20 = vunpack.i.l.bf16 %v2833_v19  ;;  %v2318_v21 = vpop.permute.xlu0 %2317  ;;  %v2330_v51 = vunpack.i.h.bf16 %v2833_v19 }
  0x7c   :  { %v2320_v22 = vunpack.i.h.bf16 %v2318_v21  ;;  %v2319_v23 = vunpack.i.l.bf16 %v2318_v21 }
  0x7e   :  { %v2840_v24 = vpop.permute.xlu1 %2337  ;;  %v116_v26 = vsel %vm111_vm1, %v2319_v23, %v2320_v22  ;;  %v117_v28 = vsel %vm111_vm1, %v2329_v20, %v2319_v23  ;;  %v115_v62 = vsel %vm111_vm1, %v2320_v22, %v2330_v51 }
  0x7f   :  { %v2340_v29 = vunpack.i.h.bf16 %v2840_v24  ;;  %v2339_v30 = vunpack.i.l.bf16 %v2840_v24  ;;  %v2858_v31 = vpop.permute.xlu0 %2332  ;;  %v2078_v32 = vpack.c.bf16 %v116_v26, %v97_v25  ;;  %v2080_v33 = vpack.c.bf16 %v117_v28, %v98_v27 }
  0x80   :  { %v2335_v34 = vunpack.i.h.bf16 %v2858_v31  ;;  %v2334_v35 = vunpack.i.l.bf16 %v2858_v31  ;;  %v2096_v21 = vpack.c.bf16 %v115_v62, %v96_v8 }
  0x81   :  { %2079 = vmatprep.subr.bf16.mxu0 %v2078_v32  ;;  %v154_v36 = vsel %vm149_vm3, %v2339_v30, %v2340_v29 }
  0x82   :  { %2081 = vmatpush1.bf16.msra.mxu0 %v2080_v33  ;;  %v2866_v37 = vpop.permute.xlu1 %2347  ;;  %v135_v38 = vsel %vm130_vm2, %v2334_v35, %v2335_v34 }
  0x83   :  { %v2349_v39 = vunpack.i.l.bf16 %v2866_v37  ;;  %v2873_v40 = vpop.permute.xlu0 %2342  ;;  %v2082_v41 = vpack.c.bf16 %v154_v36, %v135_v38  ;;  %v2350_v27 = vunpack.i.h.bf16 %v2866_v37 }
  0x84   :  { %v2344_v42 = vunpack.i.l.bf16 %v2873_v40  ;;  %v2345_v28 = vunpack.i.h.bf16 %v2873_v40 }
  0x85   :  { %2083 = vmatprep.subr.bf16.mxu0 %v2082_v41  ;;  %v155_v43 = vsel %vm149_vm3, %v2349_v39, %v2339_v30 }
  0x86   :  { %v2880_v44 = vpop.permute.xlu1 %2357  ;;  %v136_v45 = vsel %vm130_vm2, %v2344_v42, %v2334_v35 }
  0x87   :  { %v2359_v46 = vunpack.i.l.bf16 %v2880_v44  ;;  %v2887_v47 = vpop.permute.xlu0 %2352  ;;  %v2084_v48 = vpack.c.bf16 %v155_v43, %v136_v45  ;;  %v2360_v43 = vunpack.i.h.bf16 %v2880_v44 }
  0x88   :  { %v2355_v49 = vunpack.i.h.bf16 %v2887_v47  ;;  %v2354_v50 = vunpack.i.l.bf16 %v2887_v47 }
  0x89   :  { %2085 = vmatpush1.bf16.msra.mxu0 %v2084_v48  ;;  %v134_v48 = vsel %vm130_vm2, %v2335_v34, %v2345_v28 }
  0x8a   :  { %v2893_v52 = vpop.permute.xlu1 %2367  ;;  %v172_v53 = vsel %vm168_vm4, %v2354_v50, %v2355_v49  ;;  %v173_v54 = vsel %vm168_vm4, %v2359_v46, %v2354_v50  ;;  %v153_v50 = vsel %vm149_vm3, %v2340_v29, %v2350_v27 }
  0x8b   :  { %v2369_v56 = vunpack.i.l.bf16 %v2893_v52  ;;  %v2905_v57 = vpop.permute.xlu0 %2362  ;;  %v2086_v58 = vpack.c.bf16 %v172_v53, %v2759_v4  ;;  %v2088_v59 = vpack.c.bf16 %v173_v54, %v2752_v2  ;;  %v2100_v34 = vpack.c.bf16 %v153_v50, %v134_v48 }
  0x8c   :  { %v2364_v60 = vunpack.i.l.bf16 %v2905_v57  ;;  %v2365_v53 = vunpack.i.h.bf16 %v2905_v57  ;;  %v171_v57 = vsel %vm168_vm4, %v2355_v49, %v2360_v43 }
  0x8d   :  { %2087 = vmatprep.subr.bf16.mxu0 %v2086_v58  ;;  %v114_v61 = vsel %vm111_vm1, %v2330_v51, %v2369_v56  ;;  %v2370_v51 = vunpack.i.h.bf16 %v2893_v52  ;;  %v2104_v19 = vpack.c.bf16 %v171_v57, %v2742_v0 }
  0x8e   :  { %2089 = vmatpush1.bf16.msra.mxu0 %v2088_v59  ;;  %v2916_v63 = vpop.permute.xlu1 %2377  ;;  %v95_v3 = vsel %vm92_vm0, %v2325_v55, %v2364_v60  ;;  %v94_v47 = vsel %vm92_vm0, %v2364_v60, %v2365_v53 }
  0x8f   :  { %v2380_v2 = vunpack.i.h.bf16 %v2916_v63  ;;  %v2379_v4 = vunpack.i.l.bf16 %v2916_v63  ;;  %v2924_v5 = vpop.permute.xlu0 %2372  ;;  %v2094_v7 = vpack.c.bf16 %v114_v61, %v95_v3  ;;  %v93_v3 = vsel %vm92_vm0, %v2365_v53, %v2324_v16 }
  0x90   :  { %v2375_v10 = vunpack.i.h.bf16 %v2924_v5  ;;  %v2374_v18 = vunpack.i.l.bf16 %v2924_v5 }
  0x91   :  { %2095 = vmatprep.subr.bf16.mxu1 %v2094_v7  ;;  %v210_v22 = vsel %vm206_vm5, %v2379_v4, %v2380_v2 }
  0x92   :  { %2097 = vmatpush1.bf16.msra.mxu1 %v2096_v21  ;;  %v2936_v23 = vpop.permute.xlu1 %194  ;;  %v191_v14 = vsel %vm187_vm6, %v2374_v18, %v2375_v10 }
  0x93   :  { %v2942_v17 = vpop.permute.xlu0 %2382  ;;  %v2090_v25 = vpack.c.bf16 %v210_v22, %v191_v14  ;;  %v211_v30 = vsel %vm206_vm5, %v2936_v23, %v2379_v4  ;;  %v112_v4 = vsel %vm111_vm1, %v2370_v51, %v2329_v20  ;;  %v73_v20 = vld [vmem:[%s4415_s5] sm:$0xff] }
  0x94   :  { %v2384_v26 = vunpack.i.l.bf16 %v2942_v17  ;;  %v2385_v60 = vunpack.i.h.bf16 %v2942_v17  ;;  %v2110_v7 = vpack.c.bf16 %v112_v4, %v93_v3 }
  0x95   :  { %2091 = vmatprep.subr.bf16.mxu0 %v2090_v25 }
  0x96   :  { %v2393_v32 = vpop.permute.xlu1 %2392  ;;  %v192_v33 = vsel %vm187_vm6, %v2384_v26, %v2374_v18  ;;  %v190_v25 = vsel %vm187_vm6, %v2375_v10, %v2385_v60 }
  0x97   :  { %v2394_v35 = vunpack.i.l.bf16 %v2393_v32  ;;  %v2388_v36 = vpop.permute.xlu0 %2387  ;;  %v2092_v38 = vpack.c.bf16 %v211_v30, %v192_v33  ;;  %v2395_v31 = vunpack.i.h.bf16 %v2393_v32 }
  0x98   :  { %v2389_v41 = vunpack.i.l.bf16 %v2388_v36  ;;  %v2390_v61 = vunpack.i.h.bf16 %v2388_v36 }
  0x99   :  { %2093 = vmatpush1.bf16.msra.mxu0 %v2092_v38  ;;  %v152_v45 = vsel %vm149_vm3, %v2350_v27, %v2394_v35  ;;  %v151_v0 = vsel %vm149_vm3, %v2394_v35, %v2395_v31 }
  0x9a   :  { %v216_v54 = vpop.permute.xlu1 %215  ;;  %v133_v55 = vsel %vm130_vm2, %v2345_v28, %v2389_v41  ;;  %v131_v52 = vsel %vm130_vm2, %v2390_v61, %v2344_v42  ;;  %v132_v40 = vsel %vm130_vm2, %v2389_v41, %v2390_v61  ;;  %v68_v61 = vld [vmem:[%s4416_s3 + $0x8] sm:$0xff] }
  0x9b   :  { %v165_v58 = vpop.permute.xlu0 %164  ;;  %v2098_v59 = vpack.c.bf16 %v152_v45, %v133_v55  ;;  %v2116_v30 = vpack.c.bf16 %v151_v0, %v132_v40  ;;  %v32_v55 = vshrl.u32 %v31_v12, 7 }
  0x9c   :  { %v170_v24 = vsel %vm168_vm4, %v2360_v43, %v165_v58 }
  0x9d   :  { %2099 = vmatprep.subr.bf16.mxu1 %v2098_v59  ;;  %v2102_v29 = vpack.c.bf16 %v170_v24, %v2772_v6  ;;  %v113_v6 = vsel %vm111_vm1, %v2369_v56, %v2370_v51  ;;  %v150_v56 = vsel %vm149_vm3, %v2395_v31, %v2349_v39  ;;  %v41_v59 = vsub.s32 2, %v32_v55  ;;  %v29_v31 = vld [vmem:[%s4417_s4] sm:$0x3f]  ;;  %v69_v24 = vld [vmem:[%s4416_s3 + $0x10] sm:$0xff] }
  0x9e   :  { %2101 = vmatpush1.bf16.msra.mxu1 %v2100_v34  ;;  %v2977_v62 = vpop.permute.xlu1 %213  ;;  %v2112_v18 = vpack.c.bf16 %v113_v6, %v94_v47  ;;  %v2114_v39 = vpack.c.bf16 %v150_v56, %v131_v52  ;;  %v67_v6 = vld [vmem:[%s4416_s3] sm:$0xff]  ;;  %v72_v56 = vld [vmem:[%s4416_s3 + $0x28] sm:$0xff] }
  0x9f   :  { %v218_v49 = vpop.permute.xlu0 %217  ;;  %2103 = vmatprep.subr.bf16.mxu1 %v2102_v29  ;;  %v230_v13 = vsel %vm225_vm7, %v2977_v62, %v216_v54  ;;  %v3073_v57 = vrot.slane %v29_v31, %v41_v59 }
  0xa0   :  { %v229_v16 = vsel %vm225_vm7, %v216_v54, %v218_v49 }
  0xa1   :  { %252 = vmatprep.subr.mxu0 %v229_v16 }
  0xa2   :  { %253 = vmatpush1.msra.mxu0 %v230_v13  ;;  %2105 = vmatpush1.bf16.msra.mxu1 %v2104_v19  ;;  %v2398_v8 = vpop.permute.xlu1 %2397 }
  0xa3   :  { %v2400_v42 = vunpack.i.h.bf16 %v2398_v8  ;;  %v2399_v21 = vunpack.i.l.bf16 %v2398_v8  ;;  %v184_v37 = vpop.permute.xlu0 %183  ;;  %2111 = vmatprep.subr.bf16.mxu0 %v2110_v7  ;;  %2066 = vmatmul.mubr.msk.f32.vlgmr.msra.gmra.mrb[0].mxu0 %vm232_vm8, %v73_v20 }
  0xa4   :  { %2113 = vmatpush1.bf16.msra.mxu0 %v2112_v18  ;;  %442 = vmatprep.mubr.f32.mxu0 %v4429_v11  ;;  %v189_v22 = vsel %vm187_vm6, %v2385_v60, %v184_v37 }
  0xa5   :  { %2115 = vmatprep.subr.bf16.mxu0 %v2114_v39  ;;  %v208_v14 = vsel %vm206_vm5, %v2399_v21, %v2400_v42  ;;  %v209_v27 = vsel %vm206_vm5, %v2380_v2, %v2399_v21  ;;  %v49_v21 = vsub.s32 4, %v32_v55  ;;  %v45_v39 = vsub.s32 3, %v32_v55 }
  0xa6   :  { %v220_v28 = vpop.permute.xlu1 %219  ;;  %v2106_v32 = vpack.c.bf16 %v208_v14, %v189_v22  ;;  %v2108_v33 = vpack.c.bf16 %v209_v27, %v190_v25  ;;  %v70_v22 = vld [vmem:[%s4416_s3 + $0x18] sm:$0xff] }
  0xa7   :  { %v167_v35 = vpop.permute.xlu0 %166  ;;  %v228_v44 = vsel %vm225_vm7, %v218_v49, %v220_v28  ;;  %v3122_v14 = vrot.slane %v29_v31, %v49_v21  ;;  %v3124_v27 = vrot.slane %v29_v31, %v45_v39 }
  0xa8   :  { %v169_v36 = vsel %vm168_vm4, %v165_v58, %v167_v35  ;;  %v174_v5 = vsel %vm168_vm4, %v167_v35, %v2359_v46  ;;  %2117 = vmatpush1.bf16.msra.mxu0 %v2116_v30  ;;  %2107 = vmatprep.subr.bf16.mxu1 %v2106_v32  ;;  %v37_v58 = vsub.s32 1, %v32_v55 }
  0xa9   :  { %v2120_v63 = vpack.c.bf16 %v169_v36, %v2783_v9  ;;  %2109 = vmatpush1.bf16.msra.mxu1 %v2108_v33  ;;  %v2118_v2 = vpack.c.bf16 %v174_v5, %v2747_v1  ;;  %4465 = vst [vmem:[#allocation3_spill] sm:$0xff] %v3122_v14 }
  0xaa   :  { %v186_v10 = vpop.permute.xlu1 %185  ;;  %v3071_v34 = vrot.slane %v29_v31, %v37_v58 }
  0xab   :  { %v222_v38 = vpop.permute.xlu0 %221  ;;  %2119 = vmatprep.subr.bf16.mxu0 %v2118_v2  ;;  %v188_v43 = vsel %vm187_vm6, %v184_v37, %v186_v10  ;;  %v193_v1 = vsel %vm187_vm6, %v186_v10, %v2384_v26  ;;  %v71_v37 = vld [vmem:[%s4416_s3 + $0x20] sm:$0xff] }
  0xac   :  { %2121 = vmatpush1.bf16.msra.mxu0 %v2120_v63  ;;  %v227_v41 = vsel %vm225_vm7, %v220_v28, %v222_v38 }
  0xad   :  { %323 = vmatprep.subr.mxu1 %v227_v41 }
  0xae   :  { %324 = vmatpush1.msra.mxu1 %v228_v44  ;;  %v224_v50 = vpop.permute.xlu1 %223 }
  0xaf   :  { %v205_v46 = vpop.permute.xlu0 %204  ;;  %2067 = vmatmul.mubr.msk.f32.vlgmr.msra.gmra.mrb[0].mxu1 %vm232_vm8, %v73_v20  ;;  %v231_v17 = vsel %vm225_vm7, %v224_v50, %v2977_v62  ;;  %v226_v26 = vsel %vm225_vm7, %v222_v38, %v224_v50  ;;  %v33_v62 = vsub.s32 0, %v32_v55 }
  0xb0   :  { %v207_v45 = vsel %vm206_vm5, %v2400_v42, %v205_v46  ;;  %v212_v48 = vsel %vm206_vm5, %v205_v46, %v2936_v23  ;;  %690 = vmatprep.mubr.f32.mxu1 %v4429_v11 }
  0xb1   :  { %v2124_v51 = vpack.c.bf16 %v207_v45, %v188_v43  ;;  %v2122_v53 = vpack.c.bf16 %v212_v48, %v193_v1  ;;  %v3084_v13 = vrot.slane %v29_v31, %v33_v62 }
  0xb3   :  { %2123 = vmatprep.subr.bf16.mxu0 %v2122_v53 }
  0xb4   :  { %2125 = vmatpush1.bf16.msra.mxu0 %v2124_v51 }
  0xb5   :  { %394 = vmatprep.subr.mxu0 %v231_v17 }
  0xb8   :  { %395 = vmatpush1.msra.mxu0 %v226_v26 }
  0xb9   :  { %2068 = vmatmul.mubr.msk.f32.vlgmr.msra.gmra.mrb[2].mxu0 %vm232_vm8, %v73_v20  ;;  %v53_v20 = vsub.s32 5, %v32_v55 }
  0xba   :  { %761 = vmatprep.mubr.f32.mxu0 %v4429_v11 }
  0xbb   :  { %v3096_v7 = vrot.slane %v29_v31, %v53_v20 }
  0xbd   :  { %4464 = vst [vmem:[#allocation2_spill] sm:$0xff] %v3096_v7 }
 0x176   :  { %v302_v23 = vpop.f32.mrb[0].mxu0 }
 0x177   :  { %v304_v54 = vpop.f32.mrb[1].mxu0  ;;  %v449_v16 = vsub.f32 %v302_v23, %v67_v6 }
 0x178   :  { %v450_v29 = vsub.f32 %v304_v54, %v68_v61 }
 0x179   :  { %v3091_v52 = vmul.f32 %v449_v16, %v3084_v13 }
 0x17a   :  { %v3079_v47 = vmul.f32 %v450_v29, %v3071_v34 }
 0x17c   :  { %v2431_v18 = vpack.i.bf16 %v3079_v47, %v3091_v52 }
 0x182   :  { %v373_v12 = vpop.f32.mrb[0].mxu1 }
 0x183   :  { %v451_v3 = vsub.f32 %v373_v12, %v69_v24  ;;  %v375_v4 = vpop.f32.mrb[1].mxu1 }
 0x184   :  { %v452_v28 = vsub.f32 %v375_v4, %v70_v22 }
 0x185   :  { %v3082_v49 = vmul.f32 %v451_v3, %v3073_v57 }
 0x186   :  { %v3134_v32 = vmul.f32 %v452_v28, %v3124_v27 }
 0x187   :  { %v2406_v19 = vpack.i.bf16 %v3082_v49, %v3079_v47 }
 0x189   :  { %2407 = vrot.lane.b32.xlu1 %v2406_v19, %s2685_s26  ;;  %2402 = vrot.lane.b32.xlu0 %v2406_v19, %s2688_s28 }
 0x18c   :  { %v444_v60 = vpop.f32.mrb[2].mxu0 }
 0x18d   :  { %2417 = vrot.lane.b32.xlu1 %v2406_v19, %s2684_s25  ;;  %2412 = vrot.lane.b32.xlu0 %v2406_v19, %s2686_s27  ;;  %v446_v0 = vpop.f32.mrb[3].mxu0  ;;  %v453_v25 = vsub.f32 %v444_v60, %v71_v37 }
 0x18e   :  { %v454_v8 = vsub.f32 %v446_v0, %v72_v56 }
 0x18f   :  { %v3131_v30 = vmul.f32 %v453_v25, %v3122_v14 }
 0x190   :  { %v3103_v40 = vmul.f32 %v454_v8, %v3096_v7 }
 0x191   :  { %2432 = vrot.lane.b32.xlu1 %v2431_v18, %s2681_s18  ;;  %2422 = vrot.lane.b32.xlu0 %v2431_v18, %s2682_s19  ;;  %v2461_v33 = vpack.i.bf16 %v3134_v32, %v3131_v30 }
 0x192   :  { %v2441_v42 = vpack.i.bf16 %v3103_v40, %v3091_v52 }
 0x195   :  { %2427 = vrot.lane.b32.xlu0 %v2431_v18, %s2683_s20  ;;  %2442 = vrot.lane.b32.xlu1 %v2441_v42, %s2685_s26 }
 0x199   :  { %2452 = vrot.lane.b32.xlu1 %v2441_v42, %s2684_s25  ;;  %2437 = vrot.lane.b32.xlu0 %v2441_v42, %s2688_s28 }
 0x19d   :  { %543 = vrot.lane.b32.xlu1 %v3103_v40, %s2682_s19  ;;  %2447 = vrot.lane.b32.xlu0 %v2441_v42, %s2686_s27 }
 0x1a1   :  { %579 = vrot.lane.b32.xlu1 %v3103_v40, %s2681_s18  ;;  %587 = vrot.lane.b32.xlu0 %v3091_v52, %s2680_s17 }
 0x1a5   :  { %589 = vrot.lane.b32.xlu1 %v3079_v47, %s2680_s17  ;;  %561 = vrot.lane.b32.xlu0 %v3103_v40, %s2683_s20 }
 0x1a9   :  { %2462 = vrot.lane.b32.xlu1 %v2461_v33, %s2685_s26  ;;  %2457 = vrot.lane.b32.xlu0 %v2461_v33, %s2688_s28 }
 0x1ad   :  { %2467 = vrot.lane.b32.xlu1 %v2461_v33, %s2686_s27  ;;  %597 = vrot.lane.b32.xlu0 %v3103_v40, %s2680_s17 }
 0x1b1   :  { %2477 = vrot.lane.b32.xlu1 %v2461_v33, %s2682_s19  ;;  %2472 = vrot.lane.b32.xlu0 %v2461_v33, %s2684_s25 }
 0x1b5   :  { %2487 = vrot.lane.b32.xlu1 %v2461_v33, %s2681_s18  ;;  %2482 = vrot.lane.b32.xlu0 %v2461_v33, %s2683_s20 }
 0x1b9   :  { %595 = vrot.lane.b32.xlu1 %v3131_v30, %s2680_s17  ;;  %537 = vrot.lane.b32.xlu0 %v3082_v49, %s2682_s19 }
 0x1bd   :  { %555 = vrot.lane.b32.xlu1 %v3082_v49, %s2683_s20  ;;  %593 = vrot.lane.b32.xlu0 %v3134_v32, %s2680_s17 }
 0x1c1   :  { %591 = vrot.lane.b32.xlu1 %v3082_v49, %s2680_s17  ;;  %573 = vrot.lane.b32.xlu0 %v3082_v49, %s2681_s18 }
 0x1fb   :  { %v3163_v35 = vpop.permute.xlu1 %2407  ;;  %v3165_v36 = vpop.permute.xlu0 %2402 }
 0x1fc   :  { %v2410_v5 = vunpack.i.h.bf16 %v3163_v35  ;;  %v2409_v63 = vunpack.i.l.bf16 %v3163_v35  ;;  %v2405_v2 = vunpack.i.h.bf16 %v3165_v36  ;;  %v2404_v10 = vunpack.i.l.bf16 %v3165_v36 }
 0x1fe   :  { %v476_v38 = vsel %vm225_vm7, %v2404_v10, %v2405_v2  ;;  %v494_v41 = vsel %vm206_vm5, %v2409_v63, %v2410_v5 }
 0x1ff   :  { %v3179_v44 = vpop.permute.xlu1 %2417  ;;  %v3181_v46 = vpop.permute.xlu0 %2412  ;;  %v2126_v43 = vpack.c.bf16 %v494_v41, %v476_v38 }
 0x200   :  { %v2420_v51 = vunpack.i.h.bf16 %v3179_v44  ;;  %v2419_v53 = vunpack.i.l.bf16 %v3179_v44  ;;  %v2415_v17 = vunpack.i.h.bf16 %v3181_v46  ;;  %v2414_v26 = vunpack.i.l.bf16 %v3181_v46 }
 0x201   :  { %2127 = vmatprep.subr.bf16.mxu1 %v2126_v43 }
 0x202   :  { %v512_v61 = vsel %vm187_vm6, %v2414_v26, %v2415_v17  ;;  %v530_v24 = vsel %vm168_vm4, %v2419_v53, %v2420_v51 }
 0x203   :  { %v3183_v1 = vpop.permute.xlu1 %2432  ;;  %v3185_v45 = vpop.permute.xlu0 %2422  ;;  %v2130_v19 = vpack.c.bf16 %v530_v24, %v512_v61 }
 0x204   :  { %v2425_v59 = vunpack.i.h.bf16 %v3185_v45  ;;  %v2424_v31 = vunpack.i.l.bf16 %v3185_v45  ;;  %v2435_v18 = vunpack.i.h.bf16 %v3183_v1  ;;  %v2434_v42 = vunpack.i.l.bf16 %v3183_v1 }
 0x206   :  { %v549_v60 = vsel %vm149_vm3, %v2424_v31, %v2425_v59  ;;  %v585_v38 = vsel %vm111_vm1, %v2434_v42, %v2435_v18 }
 0x207   :  { %v3187_v48 = vpop.permute.xlu0 %2427  ;;  %v3189_v50 = vpop.permute.xlu1 %2442  ;;  %v2134_v25 = vpack.c.bf16 %v549_v60, %v3079_v47 }
 0x208   :  { %v2444_v23 = vunpack.i.l.bf16 %v3189_v50  ;;  %v2430_v20 = vunpack.i.h.bf16 %v3187_v48  ;;  %v2429_v56 = vunpack.i.l.bf16 %v3187_v48 }
 0x20a   :  { %v495_v29 = vsel %vm206_vm5, %v2444_v23, %v2409_v63  ;;  %v567_v28 = vsel %vm130_vm2, %v2429_v56, %v2430_v20 }
 0x20b   :  { %v3196_v54 = vpop.permute.xlu1 %2452  ;;  %v2438_v55 = vpop.permute.xlu0 %2437  ;;  %v2138_v41 = vpack.c.bf16 %v585_v38, %v567_v28 }
 0x20c   :  { %v2439_v58 = vunpack.i.l.bf16 %v2438_v55  ;;  %v2454_v12 = vunpack.i.l.bf16 %v3196_v54  ;;  %v2440_v43 = vunpack.i.h.bf16 %v2438_v55 }
 0x20e   :  { %v477_v62 = vsel %vm225_vm7, %v2439_v58, %v2404_v10  ;;  %v531_v0 = vsel %vm168_vm4, %v2454_v12, %v2419_v53  ;;  %v2445_v53 = vunpack.i.h.bf16 %v3189_v50 }
 0x20f   :  { %v2128_v3 = vpack.c.bf16 %v495_v29, %v477_v62  ;;  %v3215_v4 = vpop.permute.xlu1 %543  ;;  %v3217_v6 = vpop.permute.xlu0 %2447 }
 0x210   :  { %v2449_v16 = vunpack.i.l.bf16 %v3217_v6  ;;  %v550_v22 = vsel %vm149_vm3, %v3215_v4, %v2424_v31  ;;  %v496_v28 = vsel %vm206_vm5, %v2445_v53, %v2444_v23 }
 0x211   :  { %2129 = vmatpush1.bf16.msra.mxu1 %v2128_v3  ;;  %v2136_v33 = vpack.c.bf16 %v550_v22, %v3091_v52 }
 0x212   :  { %v513_v8 = vsel %vm187_vm6, %v2449_v16, %v2414_v26  ;;  %2131 = vmatprep.subr.bf16.mxu1 %v2130_v19  ;;  %v2450_v26 = vunpack.i.h.bf16 %v3217_v6 }
 0x213   :  { %v2132_v21 = vpack.c.bf16 %v531_v0, %v513_v8  ;;  %v3234_v37 = vpop.permute.xlu1 %579  ;;  %v588_v39 = vpop.permute.xlu0 %587  ;;  %v478_v8 = vsel %vm225_vm7, %v2440_v43, %v2439_v58 }
 0x214   :  { %v586_v52 = vsel %vm111_vm1, %v3234_v37, %v2434_v42 }
 0x215   :  { %2133 = vmatpush1.bf16.msra.mxu1 %v2132_v21 }
 0x216   :  { %2135 = vmatprep.subr.bf16.mxu1 %v2134_v25 }
 0x217   :  { %v3245_v63 = vpop.permute.xlu1 %589  ;;  %v3247_v10 = vpop.permute.xlu0 %561 }
 0x218   :  { %v568_v47 = vsel %vm130_vm2, %v3247_v10, %v2429_v56  ;;  %v2455_v56 = vunpack.i.h.bf16 %v3196_v54  ;;  %v603_v55 = vsel %vm92_vm0, %v588_v39, %v3245_v63 }
 0x219   :  { %2137 = vmatpush1.bf16.msra.mxu1 %v2136_v33  ;;  %v2140_v31 = vpack.c.bf16 %v586_v52, %v568_v47  ;;  %v514_v33 = vsel %vm187_vm6, %v2450_v26, %v2449_v16 }
 0x21a   :  { %2139 = vmatprep.subr.bf16.mxu1 %v2138_v41  ;;  %v2158_v41 = vpack.c.bf16 %v496_v28, %v478_v8  ;;  %v532_v50 = vsel %vm168_vm4, %v2455_v56, %v2454_v12 }
 0x21b   :  { %v2463_v61 = vpop.permute.xlu1 %2462  ;;  %v2458_v24 = vpop.permute.xlu0 %2457  ;;  %v2162_v52 = vpack.c.bf16 %v532_v50, %v514_v33 }
 0x21c   :  { %v2465_v29 = vunpack.i.h.bf16 %v2463_v61  ;;  %v2464_v62 = vunpack.i.l.bf16 %v2463_v61  ;;  %v2460_v3 = vunpack.i.h.bf16 %v2458_v24  ;;  %v2459_v19 = vunpack.i.l.bf16 %v2458_v24 }
 0x21d   :  { %2141 = vmatpush1.bf16.msra.mxu1 %v2140_v31 }
 0x21e   :  { %v493_v60 = vsel %vm206_vm5, %v2410_v5, %v2465_v29  ;;  %v491_v6 = vsel %vm206_vm5, %v2464_v62, %v2445_v53  ;;  %v475_v0 = vsel %vm225_vm7, %v2405_v2, %v2460_v3  ;;  %642 = vmatprep.subr.mxu1 %v603_v55  ;;  %v473_v21 = vsel %vm225_vm7, %v2459_v19, %v2440_v43  ;;  %v3288_v2 = vld [vmem:[%s4415_s5 + $0x8] sm:$0xff] }
 0x21f   :  { %v2144_v42 = vpack.c.bf16 %v493_v60, %v475_v0  ;;  %v2468_v35 = vpop.permute.xlu1 %2467  ;;  %v3279_v22 = vpop.permute.xlu0 %597  ;;  %v474_v5 = vsel %vm225_vm7, %v2460_v3, %v2459_v19  ;;  %v492_v36 = vsel %vm206_vm5, %v2465_v29, %v2464_v62  ;;  %v2160_v43 = vpack.c.bf16 %v491_v6, %v473_v21 }
 0x220   :  { %v604_v58 = vsel %vm92_vm0, %v3279_v22, %v588_v39  ;;  %v2142_v25 = vpack.c.bf16 %v492_v36, %v474_v5  ;;  %v2470_v38 = vunpack.i.h.bf16 %v2468_v35  ;;  %v2469_v47 = vunpack.i.l.bf16 %v2468_v35 }
 0x221   :  { %643 = vmatpush1.msra.mxu1 %v604_v58 }
 0x222   :  { %2143 = vmatprep.subr.bf16.mxu0 %v2142_v25  ;;  %2069 = vmatmul.mubr.msk.f32.vlgmr.msra.gmra.mrb[2].mxu1 %vm232_vm8, %v3288_v2  ;;  %v511_v54 = vsel %vm187_vm6, %v2415_v17, %v2470_v38  ;;  %v509_v12 = vsel %vm187_vm6, %v2469_v47, %v2450_v26  ;;  %v510_v62 = vsel %vm187_vm6, %v2470_v38, %v2469_v47 }
 0x223   :  { %2145 = vmatpush1.bf16.msra.mxu0 %v2144_v42  ;;  %2159 = vmatprep.subr.bf16.mxu1 %v2158_v41  ;;  %v2478_v23 = vpop.permute.xlu1 %2477  ;;  %v2473_v39 = vpop.permute.xlu0 %2472 }
 0x224   :  { %v2480_v16 = vunpack.i.h.bf16 %v2478_v23  ;;  %v2479_v53 = vunpack.i.l.bf16 %v2478_v23  ;;  %v2475_v31 = vunpack.i.h.bf16 %v2473_v39  ;;  %v2474_v61 = vunpack.i.l.bf16 %v2473_v39  ;;  %2161 = vmatpush1.bf16.msra.mxu1 %v2160_v43  ;;  %832 = vmatprep.mubr.f32.mxu1 %v4429_v11  ;;  %v2661_v39 = vld [vmem:[%s4414_s0] sm:$0xff] }
 0x225   :  { %2163 = vmatprep.subr.bf16.mxu1 %v2162_v52 }
 0x226   :  { %v529_v24 = vsel %vm168_vm4, %v2420_v51, %v2475_v31  ;;  %v527_v29 = vsel %vm168_vm4, %v2474_v61, %v2455_v56  ;;  %v528_v46 = vsel %vm168_vm4, %v2475_v31, %v2474_v61  ;;  %v546_v17 = vsel %vm149_vm3, %v2480_v16, %v2479_v53 }
 0x227   :  { %v2148_v3 = vpack.c.bf16 %v529_v24, %v511_v54  ;;  %v2164_v26 = vpack.c.bf16 %v527_v29, %v509_v12  ;;  %v2488_v19 = vpop.permute.xlu1 %2487  ;;  %v2483_v55 = vpop.permute.xlu0 %2482  ;;  %v2146_v44 = vpack.c.bf16 %v528_v46, %v510_v62  ;;  %v545_v56 = vsel %vm149_vm3, %v2479_v53, %v3215_v4 }
 0x228   :  { %v2490_v60 = vunpack.i.h.bf16 %v2488_v19  ;;  %v2489_v6 = vunpack.i.l.bf16 %v2488_v19  ;;  %v2485_v51 = vunpack.i.h.bf16 %v2483_v55  ;;  %v2484_v0 = vunpack.i.l.bf16 %v2483_v55  ;;  %v610_v19 = vld [vmem:[%s4418_s1 + $0x28] sm:$0xff] }
 0x229   :  { %2147 = vmatprep.subr.bf16.mxu0 %v2146_v44  ;;  %2165 = vmatpush1.bf16.msra.mxu1 %v2164_v26  ;;  %v2166_v8 = vpack.c.bf16 %v545_v56, %v3103_v40  ;;  %v2168_v21 = vpack.c.bf16 %v546_v17, %v3131_v30  ;;  %v609_v26 = vld [vmem:[%s4418_s1 + $0x20] sm:$0xff]  ;;  %v2663_v44 = vld [vmem:[%s4414_s0 + $0x28] sm:$0xff]  ;;  %v608_v56 = vld [vmem:[%s4418_s1 + $0x18] sm:$0xff] }
 0x22a   :  { %2149 = vmatpush1.bf16.msra.mxu0 %v2148_v3  ;;  %v563_v42 = vsel %vm130_vm2, %v2484_v0, %v3247_v10  ;;  %v582_v35 = vsel %vm111_vm1, %v2490_v60, %v2489_v6  ;;  %v581_v58 = vsel %vm111_vm1, %v2489_v6, %v3234_v37  ;;  %v564_v4 = vsel %vm130_vm2, %v2485_v51, %v2484_v0 }
 0x22b   :  { %v596_v5 = vpop.permute.xlu1 %595  ;;  %v538_v36 = vpop.permute.xlu0 %537  ;;  %2167 = vmatprep.subr.bf16.mxu1 %v2166_v8  ;;  %v2170_v10 = vpack.c.bf16 %v581_v58, %v563_v42  ;;  %v2172_v37 = vpack.c.bf16 %v582_v35, %v564_v4  ;;  %v615_v55 = vsub.f32 %v2783_v9, %v609_v26  ;;  %v869_v35 = vmul.f32 0.9999, %v2661_v39 }
 0x22c   :  { %v547_v40 = vsel %vm149_vm3, %v538_v36, %v2480_v16  ;;  %v548_v30 = vsel %vm149_vm3, %v2425_v59, %v538_v36  ;;  %v599_v45 = vsel %vm92_vm0, %v596_v5, %v3279_v22 }
 0x22d   :  { %v2150_v25 = vpack.c.bf16 %v547_v40, %v3134_v32  ;;  %v2152_v28 = vpack.c.bf16 %v548_v30, %v3082_v49  ;;  %2169 = vmatpush1.bf16.msra.mxu1 %v2168_v21  ;;  %v621_v6 = vmul.f32 9.765625e-05, %v615_v55 }
 0x22e   :  { %2171 = vmatprep.subr.bf16.mxu1 %v2170_v10  ;;  %v2665_v10 = vld [vmem:[%s4414_s0 + $0x18] sm:$0xff] }
 0x22f   :  { %v556_v33 = vpop.permute.xlu1 %555  ;;  %v594_v38 = vpop.permute.xlu0 %593  ;;  %2151 = vmatprep.subr.bf16.mxu0 %v2150_v25  ;;  %v614_v25 = vsub.f32 %v2665_v10, %v608_v56 }
 0x230   :  { %2153 = vmatpush1.bf16.msra.mxu0 %v2152_v28  ;;  %v565_v59 = vsel %vm130_vm2, %v556_v33, %v2485_v51  ;;  %v566_v49 = vsel %vm130_vm2, %v2430_v20, %v556_v33  ;;  %v600_v32 = vsel %vm92_vm0, %v594_v38, %v596_v5  ;;  %v605_v20 = vld [vmem:[%s4418_s1] sm:$0xff]  ;;  %v607_v51 = vld [vmem:[%s4418_s1 + $0x10] sm:$0xff] }
 0x231   :  { %2173 = vmatpush1.bf16.msra.mxu1 %v2172_v37  ;;  %v611_v52 = vsub.f32 %v2661_v39, %v605_v20  ;;  %v2664_v5 = vld [vmem:[%s4414_s0 + $0x10] sm:$0xff] }
 0x232   :  { %784 = vmatprep.subr.mxu1 %v599_v45  ;;  %v613_v36 = vsub.f32 %v2664_v5, %v607_v51  ;;  %v872_v51 = vmul.f32 0.9999, %v2665_v10 }
 0x233   :  { %v574_v47 = vpop.permute.xlu0 %573  ;;  %v592_v43 = vpop.permute.xlu1 %591  ;;  %v617_v16 = vmul.f32 9.765625e-05, %v611_v52 }
 0x234   :  { %v583_v41 = vsel %vm111_vm1, %v574_v47, %v2490_v60  ;;  %v584_v22 = vsel %vm111_vm1, %v2435_v18, %v574_v47  ;;  %v601_v48 = vsel %vm92_vm0, %v592_v43, %v594_v38  ;;  %v602_v1 = vsel %vm92_vm0, %v3245_v63, %v592_v43  ;;  %v606_v18 = vld [vmem:[%s4418_s1 + $0x8] sm:$0xff] }
 0x235   :  { %v2154_v50 = vpack.c.bf16 %v583_v41, %v565_v59  ;;  %v2156_v23 = vpack.c.bf16 %v584_v22, %v566_v49  ;;  %785 = vmatpush1.msra.mxu1 %v600_v32  ;;  %v2662_v63 = vld [vmem:[%s4414_s0 + $0x8] sm:$0xff]  ;;  %v616_v60 = vsub.f32 %v2663_v44, %v610_v19  ;;  %v619_v47 = vmul.f32 9.765625e-05, %v613_v36 }
 0x236   :  { %2071 = vmatmul.mubr.msk.f32.vlgmr.msra.gmra.mrb[4].mxu1 %vm232_vm8, %v3288_v2  ;;  %v870_v4 = vmul.f32 0.9999, %v2662_v63  ;;  %v620_v41 = vmul.f32 9.765625e-05, %v614_v25  ;;  %v3522_v36 = vld [vmem:[%s4420_s2 + $0x8] sm:$0xff]  ;;  %v3562_v25 = vld [vmem:[%s4420_s2 + $0x18] sm:$0xff] }
 0x237   :  { %2155 = vmatprep.subr.bf16.mxu0 %v2154_v50  ;;  %1172 = vmatprep.mubr.f32.mxu1 %v4429_v11  ;;  %v622_v0 = vmul.f32 9.765625e-05, %v616_v60  ;;  %4470 = vst [vmem:[#allocation8_spill] sm:$0xff] %v3562_v25 }
 0x238   :  { %2157 = vmatpush1.bf16.msra.mxu0 %v2156_v23 }
 0x239   :  { %713 = vmatprep.subr.mxu0 %v601_v48 }
 0x23c   :  { %714 = vmatpush1.msra.mxu0 %v602_v1 }
 0x23d   :  { %2070 = vmatmul.mubr.msk.f32.vlgmr.msra.gmra.mrb[4].mxu0 %vm232_vm8, %v3288_v2  ;;  %v612_v2 = vsub.f32 %v2662_v63, %v606_v18 }
 0x23e   :  { %1101 = vmatprep.mubr.f32.mxu0 %v4429_v11 }
 0x23f   :  { %v618_v53 = vmul.f32 9.765625e-05, %v612_v2 }
 0x2f5   :  { %v692_v31 = vpop.f32.mrb[2].mxu1 }
 0x2f6   :  { %v693_v61 = vadd.f32 %v692_v31, %v617_v16  ;;  %v694_v54 = vpop.f32.mrb[3].mxu1 }
 0x2f7   :  { %v695_v12 = vadd.f32 %v694_v54, %v618_v53 }
 0x2f8   :  { %v839_v24 = vmul.f32 %v693_v61, %v3084_v13 }
 0x2f9   :  { %v840_v29 = vmul.f32 %v695_v12, %v3071_v34  ;;  %v2666_v12 = vld [vmem:[%s4414_s0 + $0x20] sm:$0xff] }
 0x2fa   :  { %v845_v62 = vand.u32 2147483647, %v839_v24 }
 0x2fb   :  { %v846_v46 = vand.u32 2147483647, %v840_v29 }
 0x2fc   :  { %v851_v17 = vadd.f32 1e-08, %v845_v62  ;;  %v874_v62 = vmul.f32 0.9999, %v2663_v44  ;;  %v871_v44 = vmul.f32 0.9999, %v2664_v5 }
 0x2fd   :  { %v852_v3 = vadd.f32 1e-08, %v846_v46  ;;  %v3517_v5 = vld [vmem:[%s4420_s2] sm:$0xff] }
 0x2fe   :  { %2631 = vrcp.f32 %v851_v17 }
 0x2ff   :  { %2633 = vrcp.f32 %v852_v3 }
 0x308   :  { %v2632_v8 = vpop.eup %2631 }
 0x309   :  { %v2634_v42 = vpop.eup %2633  ;;  %v863_v21 = vmul.f32 %v2632_v8, %v839_v24  ;;  %v834_v9 = vpop.f32.mrb[4].mxu1  ;;  %v873_v24 = vmul.f32 0.9999, %v2666_v12 }
 0x30a   :  { %v864_v58 = vmul.f32 %v2634_v42, %v840_v29  ;;  %v835_v40 = vadd.f32 %v834_v9, %v621_v6  ;;  %v836_v30 = vpop.f32.mrb[5].mxu1 }
 0x30b   :  { %v875_v28 = vmul.f32 0.01, %v863_v21  ;;  %v837_v37 = vadd.f32 %v836_v30, %v622_v0 }
 0x30c   :  { %v876_v33 = vmul.f32 0.01, %v864_v58  ;;  %v843_v38 = vmul.f32 %v835_v40, %v3122_v14  ;;  %v3527_v58 = vld [vmem:[%s4420_s2 + $0x10] sm:$0xff]  ;;  %v2566_v40 = vpack.i.bf16 %v3522_v36, %v3517_v5 }
 0x30d   :  { %v3412_v45 = vsub.f32 %v869_v35, %v875_v28  ;;  %v844_v59 = vmul.f32 %v837_v37, %v3096_v7  ;;  %4468 = vst [vmem:[#allocation6_spill] sm:$0xff] %v3527_v58  ;;  %v2591_v10 = vpack.i.bf16 %v3527_v58, %v3522_v36 }
 0x30e   :  { %v3415_v49 = vsub.f32 %v870_v4, %v876_v33  ;;  %v849_v32 = vand.u32 2147483647, %v843_v38  ;;  %v3532_v4 = vld [vmem:[%s4420_s2 + $0x28] sm:$0xff] }
 0x30f   :  { %887 = vst [vmem:[%s4419_s7] sm:$0xff] %v3412_v45  ;;  %v850_v22 = vand.u32 2147483647, %v844_v59  ;;  %965 = vrot.lane.b32.xlu1 %v3412_v45, %s2684_s25  ;;  %4469 = vst [vmem:[#allocation7_spill] sm:$0xff] %v3532_v4  ;;  %v2576_v30 = vpack.i.bf16 %v3527_v58, %v3532_v4 }
 0x310   :  { %888 = vst [vmem:[%s4419_s7 + $0x8] sm:$0xff] %v3415_v49  ;;  %v855_v43 = vadd.f32 1e-08, %v849_v32  ;;  %v763_v50 = vpop.f32.mrb[4].mxu0  ;;  %v2491_v23 = vpack.i.bf16 %v3415_v49, %v3412_v45 }
 0x311   :  { %v856_v48 = vadd.f32 1e-08, %v850_v22  ;;  %v764_v1 = vadd.f32 %v763_v50, %v619_v47  ;;  %v765_v20 = vpop.f32.mrb[5].mxu0  ;;  %v2606_v47 = vpack.i.bf16 %v3562_v25, %v3527_v58  ;;  %v3579_v22 = vld [vmem:[%s4420_s2 + $0x20] sm:$0xff] }
 0x312   :  { %2635 = vrcp.f32 %v855_v43  ;;  %v766_v18 = vadd.f32 %v765_v20, %v620_v41  ;;  %2492 = vrot.lane.b32.xlu0 %v2491_v23, %s2680_s17  ;;  %4471 = vst [vmem:[#allocation9_spill] sm:$0xff] %v3579_v22 }
 0x313   :  { %2637 = vrcp.f32 %v856_v48  ;;  %v841_v39 = vmul.f32 %v764_v1, %v3073_v57  ;;  %2497 = vrot.lane.b32.xlu1 %v2491_v23, %s2681_s18  ;;  %v2616_v48 = vpack.i.bf16 %v3579_v22, %v3562_v25 }
 0x314   :  { %v842_v52 = vmul.f32 %v766_v18, %v3124_v27 }
 0x315   :  { %v847_v63 = vand.u32 2147483647, %v841_v39 }
 0x316   :  { %v848_v2 = vand.u32 2147483647, %v842_v52  ;;  %2502 = vrot.lane.b32.xlu0 %v2491_v23, %s2683_s20 }
 0x317   :  { %v853_v16 = vadd.f32 1e-08, %v847_v63  ;;  %2507 = vrot.lane.b32.xlu1 %v2491_v23, %s2682_s19 }
 0x318   :  { %v854_v53 = vadd.f32 1e-08, %v848_v2 }
 0x319   :  { %2639 = vrcp.f32 %v853_v16 }
 0x31a   :  { %2641 = vrcp.f32 %v854_v53 }
 0x31c   :  { %v2636_v31 = vpop.eup %2635 }
 0x31d   :  { %v2638_v61 = vpop.eup %2637  ;;  %v867_v54 = vmul.f32 %v2636_v31, %v843_v38 }
 0x31e   :  { %v868_v29 = vmul.f32 %v2638_v61, %v844_v59 }
 0x31f   :  { %v879_v46 = vmul.f32 0.01, %v867_v54 }
 0x320   :  { %v880_v17 = vmul.f32 0.01, %v868_v29 }
 0x321   :  { %v3438_v3 = vsub.f32 %v873_v24, %v879_v46 }
 0x322   :  { %v3440_v26 = vsub.f32 %v874_v62, %v880_v17 }
 0x323   :  { %v2640_v19 = vpop.eup %2639  ;;  %891 = vst [vmem:[%s4419_s7 + $0x20] sm:$0xff] %v3438_v3 }
 0x324   :  { %v2642_v55 = vpop.eup %2641  ;;  %892 = vst [vmem:[%s4419_s7 + $0x28] sm:$0xff] %v3440_v26  ;;  %v865_v60 = vmul.f32 %v2640_v19, %v841_v39 }
 0x325   :  { %v866_v6 = vmul.f32 %v2642_v55, %v842_v52 }
 0x326   :  { %v877_v0 = vmul.f32 0.01, %v865_v60 }
 0x327   :  { %v878_v56 = vmul.f32 0.01, %v866_v6 }
 0x328   :  { %v3450_v8 = vsub.f32 %v871_v44, %v877_v0 }
 0x329   :  { %v3452_v42 = vsub.f32 %v872_v51, %v878_v56 }
 0x32a   :  { %4466 = vst [vmem:[#allocation4_spill] sm:$0xff] %v3450_v8  ;;  %889 = vst [vmem:[%s4419_s7 + $0x10] sm:$0xff] %v3450_v8  ;;  %v2511_v21 = vpack.i.bf16 %v3450_v8, %v3415_v49  ;;  %v2531_v35 = vpack.i.bf16 %v3450_v8, %v3440_v26  ;;  %v2675_v15 = vld [vmem:[%s4419_s7 + $0x20] sm:$0xff] }
 0x32b   :  { %4467 = vst [vmem:[#allocation5_spill] sm:$0xff] %v3452_v42  ;;  %890 = vst [vmem:[%s4419_s7 + $0x18] sm:$0xff] %v3452_v42  ;;  %v2546_v9 = vpack.i.bf16 %v3438_v3, %v3452_v42 }
 0x32c   :  { %2512 = vrot.lane.b32.xlu0 %v2511_v21, %s2684_s25  ;;  %2522 = vrot.lane.b32.xlu1 %v2511_v21, %s2685_s26 }
 0x330   :  { %2517 = vrot.lane.b32.xlu0 %v2511_v21, %s2686_s27  ;;  %917 = vrot.lane.b32.xlu1 %v3452_v42, %s2681_s18 }
 0x334   :  { %899 = vrot.lane.b32.xlu0 %v3452_v42, %s2680_s17  ;;  %2532 = vrot.lane.b32.xlu1 %v2531_v35, %s2681_s18 }
 0x338   :  { %2527 = vrot.lane.b32.xlu0 %v2531_v35, %s2680_s17  ;;  %2542 = vrot.lane.b32.xlu1 %v2531_v35, %s2682_s19 }
 0x33c   :  { %2537 = vrot.lane.b32.xlu0 %v2531_v35, %s2683_s20  ;;  %1001 = vrot.lane.b32.xlu1 %v3412_v45, %s2685_s26 }
 0x340   :  { %983 = vrot.lane.b32.xlu0 %v3412_v45, %s2686_s27  ;;  %953 = vrot.lane.b32.xlu1 %v3452_v42, %s2682_s19 }
 0x344   :  { %935 = vrot.lane.b32.xlu0 %v3452_v42, %s2683_s20  ;;  %1023 = vrot.lane.b32.xlu1 %v3450_v8, %s2688_s28 }
 0x348   :  { %1021 = vrot.lane.b32.xlu0 %v3415_v49, %s2688_s28  ;;  %2547 = vrot.lane.b32.xlu1 %v2546_v9, %s2684_s25 }
 0x34c   :  { %1019 = vrot.lane.b32.xlu0 %v3412_v45, %s2688_s28  ;;  %2557 = vrot.lane.b32.xlu1 %v2546_v9, %s2685_s26 }
 0x350   :  { %2552 = vrot.lane.b32.xlu0 %v2546_v9, %s2686_s27  ;;  %1027 = vrot.lane.b32.xlu1 %v3438_v3, %s2688_s28 }
 0x354   :  { %1025 = vrot.lane.b32.xlu0 %v3452_v42, %s2688_s28  ;;  %919 = vrot.lane.b32.xlu1 %v3438_v3, %s2681_s18 }
 0x358   :  { %901 = vrot.lane.b32.xlu0 %v3438_v3, %s2680_s17  ;;  %955 = vrot.lane.b32.xlu1 %v3438_v3, %s2682_s19 }
 0x35c   :  { %937 = vrot.lane.b32.xlu0 %v3438_v3, %s2683_s20  ;;  %993 = vrot.lane.b32.xlu1 %v3440_v26, %s2686_s27 }
 0x360   :  { %975 = vrot.lane.b32.xlu0 %v3440_v26, %s2684_s25  ;;  %1029 = vrot.lane.b32.xlu1 %v3440_v26, %s2688_s28 }
 0x364   :  { %1011 = vrot.lane.b32.xlu0 %v3440_v26, %s2685_s26  ;;  %2567 = vrot.lane.b32.xlu1 %v2566_v40, %s2681_s18 }
 0x368   :  { %2562 = vrot.lane.b32.xlu0 %v2566_v40, %s2680_s17  ;;  %2577 = vrot.lane.b32.xlu1 %v2576_v30, %s2681_s18 }
 0x36c   :  { %2572 = vrot.lane.b32.xlu0 %v2576_v30, %s2680_s17  ;;  %2587 = vrot.lane.b32.xlu1 %v2566_v40, %s2682_s19 }
 0x370   :  { %2582 = vrot.lane.b32.xlu0 %v2566_v40, %s2683_s20  ;;  %1744 = vrot.lane.b32.xlu1 %v3532_v4, %s2682_s19 }
 0x374   :  { %1726 = vrot.lane.b32.xlu0 %v3532_v4, %s2683_s20  ;;  %1752 = vrot.lane.b32.xlu1 %v3517_v5, %s2684_s25 }
 0x378   :  { %2592 = vrot.lane.b32.xlu0 %v2591_v10, %s2684_s25  ;;  %2602 = vrot.lane.b32.xlu1 %v2591_v10, %s2685_s26 }
 0x37c   :  { %2597 = vrot.lane.b32.xlu0 %v2591_v10, %s2686_s27  ;;  %1788 = vrot.lane.b32.xlu1 %v3517_v5, %s2685_s26 }
 0x380   :  { %1770 = vrot.lane.b32.xlu0 %v3517_v5, %s2686_s27  ;;  %1704 = vrot.lane.b32.xlu1 %v3562_v25, %s2681_s18 }
 0x381   :  { %v3566_v28 = vpop.permute.xlu1 %965 }
 0x384   :  { %v2493_v37 = vpop.permute.xlu0 %2492  ;;  %1686 = vrot.lane.b32.xlu0 %v3562_v25, %s2680_s17  ;;  %1810 = vrot.lane.b32.xlu1 %v3527_v58, %s2688_s28 }
 0x385   :  { %v2495_v33 = vunpack.i.h.bf16 %v2493_v37  ;;  %v2494_v38 = vunpack.i.l.bf16 %v2493_v37  ;;  %v2498_v59 = vpop.permute.xlu1 %2497 }
 0x386   :  { %v2500_v32 = vunpack.i.h.bf16 %v2498_v59  ;;  %v2499_v41 = vunpack.i.l.bf16 %v2498_v59 }
 0x387   :  { %v3583_v43 = vsel %vm92_vm0, %v2494_v38, %v2495_v33 }
 0x388   :  { %v3587_v50 = vsel %vm111_vm1, %v2499_v41, %v2500_v32  ;;  %1808 = vrot.lane.b32.xlu0 %v3522_v36, %s2688_s28  ;;  %2607 = vrot.lane.b32.xlu1 %v2606_v47, %s2683_s20  ;;  %v3608_v1 = vpop.permute.xlu0 %2502 }
 0x389   :  { %v2174_v23 = vpack.c.bf16 %v3587_v50, %v3583_v43  ;;  %v3610_v20 = vpop.permute.xlu1 %2507  ;;  %v2505_v53 = vunpack.i.h.bf16 %v3608_v1  ;;  %v2504_v31 = vunpack.i.l.bf16 %v3608_v1 }
 0x38a   :  { %v2510_v61 = vunpack.i.h.bf16 %v3610_v20  ;;  %v2509_v54 = vunpack.i.l.bf16 %v3610_v20 }
 0x38b   :  { %2175 = vmatprep.subr.bf16.mxu0 %v2174_v23  ;;  %v3652_v19 = vsel %vm130_vm2, %v2504_v31, %v2505_v53 }
 0x38c   :  { %1806 = vrot.lane.b32.xlu0 %v3517_v5, %s2688_s28  ;;  %2617 = vrot.lane.b32.xlu1 %v2616_v48, %s2684_s25  ;;  %v3662_v6 = vsel %vm149_vm3, %v2509_v54, %v2510_v61 }
 0x38d   :  { %v2178_v59 = vpack.c.bf16 %v3662_v6, %v3652_v19 }
 0x390   :  { %2612 = vrot.lane.b32.xlu0 %v2606_v47, %s2682_s19  ;;  %2627 = vrot.lane.b32.xlu1 %v2616_v48, %s2685_s26 }
 0x394   :  { %2622 = vrot.lane.b32.xlu0 %v2616_v48, %s2686_s27  ;;  %1706 = vrot.lane.b32.xlu1 %v3579_v22, %s2681_s18 }
 0x398   :  { %1688 = vrot.lane.b32.xlu0 %v3579_v22, %s2680_s17  ;;  %1814 = vrot.lane.b32.xlu1 %v3579_v22, %s2688_s28 }
 0x39c   :  { %1812 = vrot.lane.b32.xlu0 %v3562_v25, %s2688_s28  ;;  %1742 = vrot.lane.b32.xlu1 %v3579_v22, %s2682_s19  ;;  %v4477_v25 = vmov 0.0  }
 0x39e   :  { %v3616_v18 = vpop.permute.xlu0 %2512  ;;  %v3618_v39 = vpop.permute.xlu1 %2522 }
 0x39f   :  { %v4431_v55 = vunpack.i.h.bf16 %v3616_v18  ;;  %v2514_v60 = vunpack.i.l.bf16 %v3616_v18  ;;  %v2525_v1 = vunpack.i.h.bf16 %v3618_v39  ;;  %v2524_v20 = vunpack.i.l.bf16 %v3618_v39 }
 0x3a0   :  { %1724 = vrot.lane.b32.xlu0 %v3579_v22, %s2683_s20  ;;  %1780 = vrot.lane.b32.xlu1 %v3532_v4, %s2686_s27 }
 0x3a2   :  { %v3624_v52 = vpop.permute.xlu0 %2517  ;;  %v3626_v63 = vpop.permute.xlu1 %917 }
 0x3a3   :  { %v4428_v47 = vunpack.i.h.bf16 %v3624_v52 }
 0x3a4   :  { %1762 = vrot.lane.b32.xlu0 %v3532_v4, %s2684_s25  ;;  %1816 = vrot.lane.b32.xlu1 %v3532_v4, %s2688_s28 }
 0x3a6   :  { %v3632_v2 = vpop.permute.xlu0 %899  ;;  %v3634_v16 = vpop.permute.xlu1 %2532 }
 0x3a7   :  { %v2535_v12 = vunpack.i.h.bf16 %v3634_v16  ;;  %v4427_v24 = vunpack.i.l.bf16 %v3634_v16 }
 0x3a8   :  { %1798 = vrot.lane.b32.xlu0 %v3532_v4, %s2685_s26 }
 0x3a9   :  { %v3658_v44 = vsel %vm111_vm1, %v2500_v32, %v2535_v12  ;;  %v3668_v51 = vsel %vm111_vm1, %v4427_v24, %v2499_v41  ;;  %v3697_v37 = vsel %vm111_vm1, %v2535_v12, %v3626_v63  ;;  %v2519_v32 = vunpack.i.l.bf16 %v3624_v52 }
 0x3aa   :  { %v3644_v29 = vpop.permute.xlu0 %2527  ;;  %v3646_v62 = vpop.permute.xlu1 %2542  ;;  %v3710_v41 = vsel %vm168_vm4, %v2514_v60, %v4431_v55 }
 0x3ab   :  { %v2530_v46 = vunpack.i.h.bf16 %v3644_v29  ;;  %v4426_v17 = vunpack.i.l.bf16 %v3644_v29  ;;  %v4425_v21 = vunpack.i.l.bf16 %v3646_v62  ;;  %v2545_v39 = vunpack.i.h.bf16 %v3646_v62 }
 0x3ad   :  { %v3672_v0 = vsel %vm92_vm0, %v2495_v33, %v2530_v46  ;;  %v3678_v56 = vsel %vm92_vm0, %v4426_v17, %v2494_v38  ;;  %v3692_v10 = vsel %vm92_vm0, %v2530_v46, %v3632_v2  ;;  %v3716_v23 = vsel %vm149_vm3, %v4425_v21, %v2509_v54 }
 0x3ae   :  { %v2176_v35 = vpack.c.bf16 %v3668_v51, %v3678_v56  ;;  %v2192_v9 = vpack.c.bf16 %v3658_v44, %v3672_v0  ;;  %v3685_v40 = vpop.permute.xlu0 %2537  ;;  %v3687_v30 = vpop.permute.xlu1 %1001  ;;  %v2190_v38 = vpack.c.bf16 %v3697_v37, %v3692_v10 }
 0x3af   :  { %v4424_v33 = vunpack.i.l.bf16 %v3685_v40  ;;  %v2540_v12 = vunpack.i.h.bf16 %v3685_v40  ;;  %v3787_v55 = vsel %vm206_vm5, %v3687_v30, %v2524_v20 }
 0x3b0   :  { %2177 = vmatpush1.bf16.msra.mxu0 %v2176_v35  ;;  %2191 = vmatprep.subr.bf16.mxu1 %v2190_v38  ;;  %v2182_v38 = vpack.c.bf16 %v3710_v41, %v3415_v49 }
 0x3b1   :  { %v3722_v48 = vsel %vm130_vm2, %v4424_v33, %v2504_v31  ;;  %2179 = vmatprep.subr.bf16.mxu0 %v2178_v59  ;;  %2193 = vmatpush1.bf16.msra.mxu1 %v2192_v9  ;;  %v3736_v31 = vsel %vm168_vm4, %v3566_v28, %v2514_v60  ;;  %v3745_v9 = vsel %vm187_vm6, %v2519_v32, %v4428_v47 }
 0x3b2   :  { %v2180_v46 = vpack.c.bf16 %v3716_v23, %v3722_v48  ;;  %v3729_v54 = vpop.permute.xlu0 %983  ;;  %v3731_v35 = vpop.permute.xlu1 %953  ;;  %v2184_v59 = vpack.c.bf16 %v3736_v31, %v3412_v45  ;;  %v3751_v60 = vsel %vm130_vm2, %v2505_v53, %v2540_v12  ;;  %v3778_v47 = vsel %vm149_vm3, %v2510_v61, %v2545_v39 }
 0x3b3   :  { %v3762_v17 = vsel %vm187_vm6, %v3729_v54, %v2519_v32  ;;  %4473 = vst [vmem:[#allocation11_spill] sm:$0xff] %v3778_v47  ;;  %v2196_v11 = vpack.c.bf16 %v3778_v47, %v3751_v60 }
 0x3b4   :  { %2181 = vmatpush1.bf16.msra.mxu0 %v2180_v46  ;;  %v3757_v46 = vsel %vm206_vm5, %v2524_v20, %v2525_v1  ;;  %v4474_v20 = vunpack.i.h.bf16 %v3616_v18 }
 0x3b5   :  { %2183 = vmatprep.subr.bf16.mxu0 %v2182_v38  ;;  %v3767_v38 = vsel %vm149_vm3, %v2545_v39, %v3731_v35  ;;  %v2186_v24 = vpack.c.bf16 %v3757_v46, %v3745_v9 }
 0x3b6   :  { %v3753_v33 = vpop.permute.xlu0 %935  ;;  %v1024_v21 = vpop.permute.xlu1 %1023  ;;  %4472 = vst [vmem:[#allocation10_spill] sm:$0xff] %v3767_v38 }
 0x3b7   :  { %v3772_v53 = vsel %vm130_vm2, %v2540_v12, %v3753_v33  ;;  %v2188_v12 = vpack.c.bf16 %v3787_v55, %v3762_v17 }
 0x3b8   :  { %v2194_v32 = vpack.c.bf16 %v3767_v38, %v3772_v53  ;;  %2185 = vmatpush1.bf16.msra.mxu0 %v2184_v59 }
 0x3b9   :  { %2187 = vmatprep.subr.bf16.mxu0 %v2186_v24 }
 0x3ba   :  { %v1022_v22 = vpop.permute.xlu0 %1021  ;;  %v3791_v4 = vpop.permute.xlu1 %2547  ;;  %2195 = vmatprep.subr.bf16.mxu1 %v2194_v32 }
 0x3bb   :  { %v2550_v61 = vunpack.i.h.bf16 %v3791_v4  ;;  %v2549_v39 = vunpack.i.l.bf16 %v3791_v4  ;;  %2197 = vmatpush1.bf16.msra.mxu1 %v2196_v11  ;;  %v3797_v59 = vsel %vm225_vm7, %v1022_v22, %v1024_v21 }
 0x3bc   :  { %2189 = vmatpush1.bf16.msra.mxu0 %v2188_v12 }
 0x3bd   :  { %v3803_v24 = vsel %vm168_vm4, %v4474_v20, %v2549_v39  ;;  %1053 = vmatprep.subr.mxu0 %v3797_v59  ;;  %v3808_v32 = vsel %vm168_vm4, %v2549_v39, %v2550_v61 }
 0x3be   :  { %4475 = vst [vmem:[#allocation12_spill] sm:$0xff] %v3803_v24  ;;  %4476 = vst [vmem:[#allocation13_spill] sm:$0xff] %v3808_v32  ;;  %v2200_v11 = vpack.c.bf16 %v3803_v24, %v3450_v8  ;;  %v3812_v4 = vpop.permute.xlu0 %1019  ;;  %v2558_v58 = vpop.permute.xlu1 %2557  ;;  %v2198_v12 = vpack.c.bf16 %v3808_v32, %v3452_v42  ;;  %v3825_v24 = vld [vmem:[%s4415_s5] sm:$0xff] }
 0x3bf   :  { %v3819_v18 = vsel %vm225_vm7, %v3812_v4, %v1022_v22  ;;  %v2560_v20 = vunpack.i.h.bf16 %v2558_v58  ;;  %v2559_v39 = vunpack.i.l.bf16 %v2558_v58  ;;  %v4479_v58 = vunpack.i.h.bf16 %v3624_v52 }
 0x3c0   :  { %1054 = vmatpush1.msra.mxu0 %v3819_v18  ;;  %2199 = vmatprep.subr.bf16.mxu1 %v2198_v12 }
 0x3c1   :  { %2072 = vmatmul.mubr.msk.f32.vlgmr.msra.gmra.mrb[6].mxu0 %vm232_vm8, %v3825_v24  ;;  %2201 = vmatpush1.bf16.msra.mxu1 %v2200_v11  ;;  %v3832_v12 = vsel %vm206_vm5, %v2525_v1, %v2559_v39  ;;  %v3846_v11 = vsel %vm206_vm5, %v2559_v39, %v2560_v20  ;;  %v4482_v39 = vunpack.i.l.bf16 %v3634_v16 }
 0x3c2   :  { %v2553_v32 = vpop.permute.xlu0 %2552  ;;  %v1028_v8 = vpop.permute.xlu1 %1027  ;;  %1243 = vmatprep.mubr.f32.mxu0 %v4477_v25  ;;  %4478 = vst [vmem:[#allocation14_spill] sm:$0xff] %v3832_v12  ;;  %4480 = vst [vmem:[#allocation15_spill] sm:$0xff] %v3846_v11 }
 0x3c3   :  { %v2555_v22 = vunpack.i.h.bf16 %v2553_v32  ;;  %v2554_v42 = vunpack.i.l.bf16 %v2553_v32 }
 0x3c5   :  { %v3838_v47 = vsel %vm187_vm6, %v4479_v58, %v2554_v42  ;;  %v3842_v7 = vsel %vm187_vm6, %v2554_v42, %v2555_v22 }
 0x3c6   :  { %v2204_v32 = vpack.c.bf16 %v3832_v12, %v3838_v47  ;;  %v1026_v14 = vpop.permute.xlu0 %1025  ;;  %v920_v1 = vpop.permute.xlu1 %919  ;;  %v2202_v52 = vpack.c.bf16 %v3846_v11, %v3842_v7 }
 0x3c7   :  { %v3854_v58 = vsel %vm225_vm7, %v1026_v14, %v1028_v8  ;;  %v3861_v38 = vsel %vm111_vm1, %v920_v1, %v4482_v39  ;;  %v3866_v12 = vsel %vm111_vm1, %v3626_v63, %v920_v1  ;;  %v3881_v16 = vsel %vm225_vm7, %v1024_v21, %v1026_v14 }
 0x3c8   :  { %2203 = vmatprep.subr.bf16.mxu1 %v2202_v52  ;;  %4481 = vst [vmem:[#allocation16_spill] sm:$0xff] %v3854_v58  ;;  %4483 = vst [vmem:[#allocation17_spill] sm:$0xff] %v3861_v38 }
 0x3c9   :  { %2205 = vmatpush1.bf16.msra.mxu1 %v2204_v32  ;;  %4484 = vst [vmem:[#allocation18_spill] sm:$0xff] %v3866_v12  ;;  %v4485_v32 = vunpack.i.l.bf16 %v3644_v29  ;;  %4488 = vst [vmem:[#allocation21_spill] sm:$0xff] %v3881_v16 }
 0x3ca   :  { %v902_v42 = vpop.permute.xlu0 %901  ;;  %1124 = vmatprep.subr.mxu1 %v3854_v58  ;;  %v956_v29 = vpop.permute.xlu1 %955 }
 0x3cb   :  { %v3872_v52 = vsel %vm92_vm0, %v902_v42, %v4485_v32  ;;  %v3877_v58 = vsel %vm92_vm0, %v3632_v2, %v902_v42  ;;  %v4489_v2 = vunpack.i.l.bf16 %v3646_v62  ;;  %v3899_v21 = vsel %vm149_vm3, %v3731_v35, %v956_v29 }
 0x3cc   :  { %4486 = vst [vmem:[#allocation19_spill] sm:$0xff] %v3872_v52  ;;  %4487 = vst [vmem:[#allocation20_spill] sm:$0xff] %v3877_v58  ;;  %v2206_v39 = vpack.c.bf16 %v3861_v38, %v3872_v52  ;;  %v2208_v63 = vpack.c.bf16 %v3866_v12, %v3877_v58  ;;  %v4492_v42 = vunpack.i.l.bf16 %v3685_v40 }
 0x3cd   :  { %1125 = vmatpush1.msra.mxu1 %v3881_v16  ;;  %v3894_v14 = vsel %vm149_vm3, %v956_v29, %v4489_v2  ;;  %4491 = vst [vmem:[#allocation23_spill] sm:$0xff] %v3899_v21 }
 0x3ce   :  { %v938_v1 = vpop.permute.xlu0 %937  ;;  %2073 = vmatmul.mubr.msk.f32.vlgmr.msra.gmra.mrb[6].mxu1 %vm232_vm8, %v3825_v24  ;;  %2207 = vmatprep.subr.bf16.mxu0 %v2206_v39  ;;  %4490 = vst [vmem:[#allocation22_spill] sm:$0xff] %v3894_v14  ;;  %v994_v35 = vpop.permute.xlu1 %993 }
 0x3cf   :  { %v3905_v32 = vsel %vm130_vm2, %v938_v1, %v4492_v42  ;;  %v3910_v39 = vsel %vm130_vm2, %v3753_v33, %v938_v1  ;;  %2209 = vmatpush1.bf16.msra.mxu0 %v2208_v63  ;;  %1356 = vmatprep.mubr.f32.mxu1 %v3745_v9  ;;  %v3932_v42 = vsel %vm187_vm6, %v2555_v22, %v994_v35 }
 0x3d0   :  { %4493 = vst [vmem:[#allocation24_spill] sm:$0xff] %v3905_v32  ;;  %4494 = vst [vmem:[#allocation25_spill] sm:$0xff] %v3910_v39  ;;  %v2210_v62 = vpack.c.bf16 %v3894_v14, %v3905_v32  ;;  %v2212_v2 = vpack.c.bf16 %v3899_v21, %v3910_v39  ;;  %v2668_v21 = vld [vmem:[%s4416_s3] sm:$0xff] }
 0x3d1   :  { %4497 = vst [vmem:[#allocation28_spill] sm:$0xff] %v3932_v42 }
 0x3d2   :  { %v976_v40 = vpop.permute.xlu0 %975  ;;  %2211 = vmatprep.subr.bf16.mxu0 %v2210_v62 }
 0x3d3   :  { %v3919_v29 = vsel %vm168_vm4, %v2550_v61, %v976_v40  ;;  %v3924_v33 = vsel %vm168_vm4, %v976_v40, %v3566_v28  ;;  %2213 = vmatpush1.bf16.msra.mxu0 %v2212_v2  ;;  %v3937_v61 = vsel %vm187_vm6, %v994_v35, %v3729_v54 }
 0x3d4   :  { %4495 = vst [vmem:[#allocation26_spill] sm:$0xff] %v3919_v29  ;;  %4496 = vst [vmem:[#allocation27_spill] sm:$0xff] %v3924_v33  ;;  %v2214_v63 = vpack.c.bf16 %v3924_v33, %v3440_v26  ;;  %v2216_v1 = vpack.c.bf16 %v3919_v29, %v3438_v3  ;;  %v1030_v3 = vpop.permute.xlu1 %1029  ;;  %v2669_v33 = vld [vmem:[%s4416_s3 + $0x8] sm:$0xff] }
 0x3d5   :  { %4498 = vst [vmem:[#allocation29_spill] sm:$0xff] %v3937_v61  ;;  %v3955_v54 = vsel %vm225_vm7, %v1030_v3, %v3812_v4 }
 0x3d6   :  { %v1012_v9 = vpop.permute.xlu0 %1011  ;;  %2215 = vmatprep.subr.bf16.mxu0 %v2214_v63  ;;  %4501 = vst [vmem:[#allocation32_spill] sm:$0xff] %v3955_v54 }
 0x3d7   :  { %v3941_v28 = vsel %vm206_vm5, %v2560_v20, %v1012_v9  ;;  %v3946_v26 = vsel %vm206_vm5, %v1012_v9, %v3687_v30  ;;  %2217 = vmatpush1.bf16.msra.mxu0 %v2216_v1  ;;  %v3960_v30 = vsel %vm225_vm7, %v1028_v8, %v1030_v3 }
 0x3d8   :  { %4499 = vst [vmem:[#allocation30_spill] sm:$0xff] %v3941_v28  ;;  %4500 = vst [vmem:[#allocation31_spill] sm:$0xff] %v3946_v26  ;;  %v2218_v22 = vpack.c.bf16 %v3946_v26, %v3937_v61  ;;  %v2220_v62 = vpack.c.bf16 %v3941_v28, %v3932_v42  ;;  %v3968_v2 = vpop.permute.xlu1 %2567 }
 0x3d9   :  { %4502 = vst [vmem:[#allocation33_spill] sm:$0xff] %v3960_v30  ;;  %v2569_v28 = vunpack.i.l.bf16 %v3968_v2  ;;  %v4504_v32 = vunpack.i.h.bf16 %v3968_v2 }
 0x3da   :  { %2219 = vmatprep.subr.bf16.mxu0 %v2218_v22  ;;  %v3966_v20 = vpop.permute.xlu0 %2562 }
 0x3db   :  { %2221 = vmatpush1.bf16.msra.mxu0 %v2220_v62  ;;  %v4503_v39 = vunpack.i.h.bf16 %v3966_v20  ;;  %v1714_v42 = vsel %vm111_vm1, %v2569_v28, %v4504_v32 }
 0x3dc   :  { %1195 = vmatprep.subr.mxu0 %v3955_v54  ;;  %v3972_v4 = vpop.permute.xlu1 %2577 }
 0x3de   :  { %v3970_v35 = vpop.permute.xlu0 %2572 }
 0x3df   :  { %1196 = vmatpush1.msra.mxu0 %v3960_v30  ;;  %v2564_v30 = vunpack.i.l.bf16 %v3966_v20  ;;  %v4505_v32 = vunpack.i.l.bf16 %v3970_v35 }
 0x3e0   :  { %2074 = vmatmul.mubr.msk.f32.vlgmr.msra.gmra.mrb[8].mxu0 %vm232_vm8, %v3825_v24  ;;  %v3976_v63 = vpop.permute.xlu1 %2587 }
 0x3e1   :  { %1326 = vmatprep.mubr.f32.mxu0 %v3583_v43  ;;  %v1696_v54 = vsel %vm92_vm0, %v2564_v30, %v4503_v39  ;;  %v1697_v11 = vsel %vm92_vm0, %v4505_v32, %v2564_v30 }
 0x3e2   :  { %v3974_v40 = vpop.permute.xlu0 %2582  ;;  %v2222_v52 = vpack.c.bf16 %v1714_v42, %v1696_v54  ;;  %v4508_v42 = vunpack.i.h.bf16 %v3976_v63 }
 0x3e3   :  { %v2584_v61 = vunpack.i.l.bf16 %v3974_v40 }
 0x3e4   :  { %v3980_v1 = vpop.permute.xlu1 %1744 }
 0x3e6   :  { %v3978_v8 = vpop.permute.xlu0 %1726 }
 0x3e8   :  { %v3984_v24 = vpop.permute.xlu1 %1752 }
 0x3ea   :  { %v3982_v9 = vpop.permute.xlu0 %2592 }
 0x3ec   :  { %v3988_v3 = vpop.permute.xlu1 %2602 }
 0x3ee   :  { %v3986_v43 = vpop.permute.xlu0 %2597 }
 0x3f0   :  { %v3996_v26 = vpop.permute.xlu1 %1788 }
 0x3f2   :  { %v3990_v22 = vpop.permute.xlu0 %1770 }
 0x3f4   :  { %v4022_v16 = vpop.permute.xlu1 %1704 }
 0x3f6   :  { %v4018_v38 = vpop.permute.xlu0 %1686 }
 0x494   :  { %v1103_v29 = vpop.f32.mrb[6].mxu0 }
 0x495   :  { %v1250_v62 = vsub.f32 %v1103_v29, %v2668_v21  ;;  %v1105_v14 = vpop.f32.mrb[7].mxu0  ;;  %v2589_v29 = vunpack.i.l.bf16 %v3976_v63  ;;  %v2595_v21 = vunpack.i.h.bf16 %v3982_v9 }
 0x496   :  { %v1251_v12 = vsub.f32 %v1105_v14, %v2669_v33  ;;  %v4506_v14 = vunpack.i.l.bf16 %v3972_v4 }
 0x497   :  { %v1256_v39 = vmul.f32 %v1250_v62, %v3084_v13  ;;  %v2594_v13 = vunpack.i.l.bf16 %v3982_v9  ;;  %v1750_v54 = vsel %vm149_vm3, %v2589_v29, %v4508_v42  ;;  %v1751_v62 = vsel %vm149_vm3, %v3980_v1, %v2589_v29 }
 0x498   :  { %v1257_v58 = vmul.f32 %v1251_v12, %v3071_v34  ;;  %v1715_v33 = vsel %vm111_vm1, %v4506_v14, %v2569_v28  ;;  %v4507_v34 = vunpack.i.h.bf16 %v3974_v40  ;;  %v4042_v28 = vpop.permute.xlu0 %1808  ;;  %v2605_v29 = vunpack.i.h.bf16 %v3988_v3 }
 0x499   :  { %v2224_v30 = vpack.c.bf16 %v1715_v33, %v1697_v11  ;;  %v1767_v11 = vsel %vm168_vm4, %v2594_v13, %v2595_v21 }
 0x49a   :  { %1262 = vmatprep.subr.mxu0 %v1257_v58  ;;  %2270 = vmatprep.subr.mxu1 %v1257_v58  ;;  %v1732_v12 = vsel %vm130_vm2, %v2584_v61, %v4507_v34  ;;  %v1733_v58 = vsel %vm130_vm2, %v3978_v8, %v2584_v61  ;;  %v2599_v61 = vunpack.i.l.bf16 %v3986_v43  ;;  %v2230_v33 = vpack.c.bf16 %v1767_v11, %v3522_v36  ;;  %v2671_v36 = vld [vmem:[%s4416_s3 + $0x18] sm:$0xff] }
 0x49b   :  { %1263 = vmatpush1.xpose.msra.mxu0 %v1256_v39  ;;  %2271 = vmatpush1.xpose.msra.mxu1 %v1256_v39  ;;  %v2226_v32 = vpack.c.bf16 %v1750_v54, %v1732_v12  ;;  %v2600_v39 = vunpack.i.h.bf16 %v3986_v43  ;;  %v1768_v34 = vsel %vm168_vm4, %v3984_v24, %v2594_v13 }
 0x49c   :  { %2223 = vmatprep.subr.bf16.mxu0 %v2222_v52  ;;  %v4056_v52 = vpop.permute.xlu1 %1810  ;;  %v4073_v42 = vpop.permute.xlu0 %1806 }
 0x49d   :  { %v1785_v13 = vsel %vm187_vm6, %v2599_v61, %v2600_v39 }
 0x49e   :  { %1327 = vmatmul.mubr.f32.vlgmr.msra.gmra.mrb[10].mxu0 %v3678_v56  ;;  %1357 = vmatmul.mubr.f32.vlgmr.msra.gmra.mrb[8].mxu1 %v3762_v17  ;;  %v2604_v56 = vunpack.i.l.bf16 %v3988_v3  ;;  %v2228_v17 = vpack.c.bf16 %v1751_v62, %v1733_v58 }
 0x49f   :  { %1331 = vmatprep.mubr.f32.mxu0 %v3587_v50  ;;  %1361 = vmatprep.mubr.f32.mxu1 %v3757_v46  ;;  %v2670_v50 = vld [vmem:[%s4416_s3 + $0x10] sm:$0xff] }
 0x4a0   :  { %2225 = vmatpush1.bf16.msra.mxu0 %v2224_v30  ;;  %v2232_v30 = vpack.c.bf16 %v1768_v34, %v3517_v5  ;;  %v1804_v62 = vsel %vm206_vm5, %v3996_v26, %v2604_v56  ;;  %v2575_v5 = vunpack.i.h.bf16 %v3970_v35  ;;  %v4510_v34 = vunpack.i.h.bf16 %v3968_v2 }
 0x4a1   :  { %v1174_v14 = vpop.f32.mrb[6].mxu1  ;;  %2227 = vmatprep.subr.bf16.mxu0 %v2226_v32  ;;  %v4511_v2 = vunpack.i.h.bf16 %v3976_v63  ;;  %v2672_v63 = vld [vmem:[%s4416_s3 + $0x20] sm:$0xff] }
 0x4a2   :  { %v1252_v12 = vsub.f32 %v1174_v14, %v2670_v50  ;;  %v1176_v46 = vpop.f32.mrb[7].mxu1  ;;  %1332 = vmatmul.mubr.f32.gmra.mrb[12].mxu0 %v3668_v51  ;;  %1362 = vmatmul.mubr.f32.gmra.mrb[10].mxu1 %v3787_v55  ;;  %v1803_v55 = vsel %vm206_vm5, %v2604_v56, %v2605_v29  ;;  %v4088_v51 = vpop.permute.xlu1 %2607  ;;  %v1694_v11 = vsel %vm92_vm0, %v2575_v5, %v4018_v38 }
 0x4a3   :  { %v1253_v54 = vsub.f32 %v1176_v46, %v2671_v36  ;;  %1336 = vmatprep.mubr.f32.mxu0 %v3652_v19  ;;  %1366 = vmatprep.mubr.f32.mxu1 %v3797_v59  ;;  %v1786_v19 = vsel %vm187_vm6, %v3990_v22, %v2599_v61  ;;  %v2234_v32 = vpack.c.bf16 %v1803_v55, %v1785_v13  ;;  %v2610_v56 = vunpack.i.h.bf16 %v4088_v51 }
 0x4a4   :  { %2229 = vmatpush1.bf16.msra.mxu0 %v2228_v17  ;;  %v1258_v59 = vmul.f32 %v1252_v12, %v3073_v57  ;;  %v4105_v57 = vpop.permute.xlu0 %2612  ;;  %v2609_v17 = vunpack.i.l.bf16 %v4088_v51  ;;  %v4512_v46 = vunpack.i.h.bf16 %v3974_v40  ;;  %v4513_v40 = vld [vmem:[#allocation10_spill] sm:$0xff] }
 0x4a5   :  { %v1259_v58 = vmul.f32 %v1253_v54, %v3124_v27  ;;  %2231 = vmatprep.subr.bf16.mxu0 %v2230_v33  ;;  %v2580_v27 = vunpack.i.h.bf16 %v3972_v4  ;;  %v2614_v61 = vunpack.i.l.bf16 %v4105_v57 }
 0x4a6   :  { %1337 = vmatmul.mubr.f32.gmra.mrb[14].mxu0 %v3722_v48  ;;  %1367 = vmatmul.mubr.f32.gmra.mrb[12].mxu1 %v3819_v18  ;;  %v2236_v48 = vpack.c.bf16 %v1804_v62, %v1786_v19  ;;  %v4108_v18 = vpop.permute.xlu1 %2617  ;;  %v1731_v36 = vsel %vm130_vm2, %v4512_v46, %v2609_v17 }
 0x4a7   :  { %1341 = vmatprep.mubr.f32.mxu0 %v3662_v6  ;;  %1372 = vmatprep.subr.mxu1 %v1259_v58  ;;  %v1712_v6 = vsel %vm111_vm1, %v2580_v27, %v4022_v16  ;;  %v2620_v50 = vunpack.i.h.bf16 %v4108_v18  ;;  %v1749_v12 = vsel %vm149_vm3, %v4511_v2, %v2614_v61 }
 0x4a8   :  { %1436 = vmatprep.mubr.f32.mxu1 %v3692_v10  ;;  %1373 = vmatpush1.xpose.msra.mxu1 %v1258_v59  ;;  %v1821_v10 = vsel %vm225_vm7, %v4042_v28, %v4056_v52  ;;  %v2238_v14 = vpack.c.bf16 %v1712_v6, %v1694_v11  ;;  %v2673_v59 = vld [vmem:[%s4416_s3 + $0x28] sm:$0xff] }
 0x4a9   :  { %2233 = vmatpush1.bf16.msra.mxu0 %v2232_v30 }
 0x4aa   :  { %1342 = vmatmul.mubr.f32.gmra.mrb[16].mxu0 %v3716_v23  ;;  %2235 = vmatprep.subr.bf16.mxu0 %v2234_v32  ;;  %v2615_v23 = vunpack.i.h.bf16 %v4105_v57 }
 0x4ab   :  { %1346 = vmatprep.mubr.f32.mxu0 %v3415_v49  ;;  %1437 = vmatmul.mubr.f32.vlgmr.msra.gmra.mrb[14].mxu1 %v3672_v0  ;;  %v1822_v49 = vsel %vm225_vm7, %v4073_v42, %v4042_v28  ;;  %v4132_v0 = vpop.permute.xlu0 %2622  ;;  %v4145_v28 = vpop.permute.xlu1 %2627 }
 0x4ac   :  { %1441 = vmatprep.mubr.f32.mxu1 %v3697_v37  ;;  %v4509_v37 = vunpack.i.h.bf16 %v3966_v20  ;;  %v1748_v20 = vsel %vm149_vm3, %v2614_v61, %v2615_v23  ;;  %v2625_v58 = vunpack.i.h.bf16 %v4132_v0  ;;  %v2630_v32 = vunpack.i.h.bf16 %v4145_v28  ;;  %v4515_v61 = vld [vmem:[#allocation2_spill] sm:$0xff] }
 0x4ad   :  { %2237 = vmatpush1.bf16.msra.mxu0 %v2236_v48  ;;  %v4514_v48 = vld [vmem:[#allocation3_spill] sm:$0xff] }
 0x4ae   :  { %1347 = vmatmul.mubr.f32.gmra.mrb[18].mxu0 %v3412_v45  ;;  %1843 = vmatprep.subr.mxu0 %v1821_v10  ;;  %v1695_v33 = vsel %vm92_vm0, %v4509_v37, %v2575_v5  ;;  %v1713_v45 = vsel %vm111_vm1, %v4510_v34, %v2580_v27  ;;  %v2629_v5 = vunpack.i.l.bf16 %v4145_v28  ;;  %v2244_v10 = vpack.c.bf16 %v1749_v12, %v1731_v36  ;;  %v4517_v37 = vld [vmem:[#allocation5_spill] sm:$0xff] }
 0x4af   :  { %1351 = vmatprep.mubr.f32.mxu0 %v3710_v41  ;;  %1442 = vmatmul.mubr.f32.gmra.mrb[16].mxu1 %v3658_v44  ;;  %v2619_v41 = vunpack.i.l.bf16 %v4108_v18  ;;  %v1730_v44 = vsel %vm130_vm2, %v2609_v17, %v2610_v56  ;;  %v1689_v19 = vpop.permute.xlu0 %1688  ;;  %v1707_v6 = vpop.permute.xlu1 %1706  ;;  %v4521_v12 = vld [vmem:[#allocation13_spill] sm:$0xff] }
 0x4b0   :  { %1446 = vmatprep.mubr.f32.mxu1 %v3772_v53  ;;  %v2240_v53 = vpack.c.bf16 %v1713_v45, %v1695_v33  ;;  %v2242_v30 = vpack.c.bf16 %v1748_v20, %v1730_v44  ;;  %v4518_v33 = vld [vmem:[#allocation8_spill] sm:$0xff]  ;;  %v1801_v44 = vsel %vm206_vm5, %v2629_v5, %v2630_v32  ;;  %v1802_v2 = vsel %vm206_vm5, %v2605_v29, %v2629_v5 }
 0x4b1   :  { %1844 = vmatpush1.msra.mxu0 %v1822_v49  ;;  %v1765_v27 = vsel %vm168_vm4, %v2619_v41, %v2620_v50  ;;  %v1766_v49 = vsel %vm168_vm4, %v2595_v21, %v2619_v41  ;;  %v4519_v21 = vld [vmem:[#allocation6_spill] sm:$0xff]  ;;  %v4520_v20 = vld [vmem:[#allocation4_spill] sm:$0xff]  ;;  %v1693_v3 = vsel %vm92_vm0, %v4018_v38, %v1689_v19  ;;  %v1711_v29 = vsel %vm111_vm1, %v4022_v16, %v1707_v6 }
 0x4b2   :  { %1352 = vmatmul.mubr.f32.gmra.mrb[20].mxu0 %v3736_v31  ;;  %2239 = vmatprep.subr.bf16.mxu0 %v2238_v14  ;;  %v4171_v31 = vld [vmem:[%s4415_s5 + $0x10] sm:$0xff]  ;;  %v4516_v14 = vld [vmem:[#allocation11_spill] sm:$0xff]  ;;  %v2246_v34 = vpack.c.bf16 %v1765_v27, %v4518_v33  ;;  %v2248_v41 = vpack.c.bf16 %v1766_v49, %v4519_v21  ;;  %v4528_v27 = vld [vmem:[#allocation21_spill] sm:$0xff] }
 0x4b3   :  { %v1245_v54 = vpop.f32.mrb[8].mxu0  ;;  %1447 = vmatmul.mubr.f32.gmra.mrb[18].mxu1 %v3751_v60  ;;  %1891 = vmatprep.mubr.f32.mxu0 %v4477_v25  ;;  %v2624_v60 = vunpack.i.l.bf16 %v4132_v0  ;;  %v1813_v9 = vpop.permute.xlu0 %1812  ;;  %v4533_v49 = vld [vmem:[#allocation17_spill] sm:$0xff]  ;;  %v4535_v0 = vld [vmem:[#allocation24_spill] sm:$0xff]  ;;  %v4537_v33 = vld [vmem:[#allocation22_spill] sm:$0xff] }
 0x4b4   :  { %v1254_v13 = vsub.f32 %v1245_v54, %v2672_v63  ;;  %v1247_v55 = vpop.f32.mrb[9].mxu0  ;;  %1451 = vmatprep.mubr.f32.mxu1 %v4513_v40  ;;  %v1815_v36 = vpop.permute.xlu1 %1814  ;;  %v4522_v63 = vld [vmem:[#allocation12_spill] sm:$0xff]  ;;  %v1820_v38 = vsel %vm225_vm7, %v4056_v52, %v1813_v9  ;;  %v4543_v21 = vld [vmem:[#allocation31_spill] sm:$0xff] }
 0x4b5   :  { %v1255_v62 = vsub.f32 %v1247_v55, %v2673_v59  ;;  %v1783_v45 = vsel %vm187_vm6, %v2624_v60, %v2625_v58  ;;  %v4523_v55 = vunpack.i.l.bf16 %v3970_v35  ;;  %v2256_v35 = vpack.c.bf16 %v1711_v29, %v1693_v3 }
 0x4b6   :  { %v1260_v11 = vmul.f32 %v1254_v13, %v4514_v48  ;;  %2075 = vmatmul.mubr.msk.f32.vlgmr.msra.gmra.mrb[22].mxu0 %vm232_vm8, %v4171_v31  ;;  %v2250_v46 = vpack.c.bf16 %v1801_v44, %v1783_v45  ;;  %v4529_v48 = vld [vmem:[#allocation7_spill] sm:$0xff]  ;;  %v4540_v44 = vld [vmem:[#allocation26_spill] sm:$0xff] }
 0x4b7   :  { %v1261_v17 = vmul.f32 %v1255_v62, %v4515_v61  ;;  %2241 = vmatpush1.bf16.msra.mxu0 %v2240_v53  ;;  %1452 = vmatmul.mubr.f32.gmra.mrb[20].mxu1 %v4516_v14  ;;  %v1784_v53 = vsel %vm187_vm6, %v2600_v39, %v2624_v60  ;;  %v1725_v43 = vpop.permute.xlu0 %1724  ;;  %v1819_v39 = vsel %vm225_vm7, %v1813_v9, %v1815_v36  ;;  %v4525_v60 = vld [vmem:[#allocation15_spill] sm:$0xff]  ;;  %v4526_v62 = vld [vmem:[#allocation14_spill] sm:$0xff]  ;;  %v4541_v9 = vld [vmem:[#allocation29_spill] sm:$0xff] }
 0x4b8   :  { %1456 = vmatprep.mubr.f32.mxu1 %v4517_v37  ;;  %2243 = vmatprep.subr.bf16.mxu0 %v2242_v30  ;;  %v2252_v54 = vpack.c.bf16 %v1802_v2, %v1784_v53  ;;  %v1743_v13 = vpop.permute.xlu1 %1742  ;;  %v1692_v40 = vsel %vm92_vm0, %v1689_v19, %v4523_v55  ;;  %v1728_v19 = vsel %vm130_vm2, %v1725_v43, %v3978_v8  ;;  %v4539_v45 = vld [vmem:[#allocation27_spill] sm:$0xff]  ;;  %v4546_v53 = vld [vmem:[#allocation33_spill] sm:$0xff] }
 0x4b9   :  { %1482 = vmatprep.subr.mxu1 %v1261_v17  ;;  %1962 = vmatprep.mubr.f32.mxu0 %v4477_v25  ;;  %v1747_v52 = vsel %vm149_vm3, %v2615_v23, %v1743_v13  ;;  %v4532_v17 = vld [vmem:[#allocation20_spill] sm:$0xff] }
 0x4ba   :  { %1483 = vmatpush1.xpose.msra.mxu1 %v1260_v11 }
 0x4bb   :  { %2245 = vmatpush1.bf16.msra.mxu0 %v2244_v10  ;;  %1457 = vmatmul.mubr.f32.gmra.mrb[22].mxu1 %v4520_v20  ;;  %v1763_v16 = vpop.permute.xlu0 %1762  ;;  %v4531_v10 = vld [vmem:[#allocation9_spill] sm:$0xff]  ;;  %v4545_v20 = vld [vmem:[#allocation32_spill] sm:$0xff] }
 0x4bc   :  { %1461 = vmatprep.mubr.f32.mxu1 %v4521_v12  ;;  %2247 = vmatprep.subr.bf16.mxu0 %v2246_v34  ;;  %v1769_v51 = vsel %vm168_vm4, %v1763_v16, %v3984_v24  ;;  %v1764_v57 = vsel %vm168_vm4, %v2620_v50, %v1763_v16  ;;  %v4538_v34 = vld [vmem:[#allocation23_spill] sm:$0xff] }
 0x4bd   :  { %v2262_v11 = vpack.c.bf16 %v1769_v51, %v4529_v48  ;;  %v2264_v61 = vpack.c.bf16 %v1764_v57, %v4531_v10 }
 0x4bf   :  { %2249 = vmatpush1.bf16.msra.mxu0 %v2248_v41  ;;  %1462 = vmatmul.mubr.f32.gmra.mrb[24].mxu1 %v4522_v63  ;;  %v1799_v23 = vpop.permute.xlu0 %1798  ;;  %v4544_v41 = vld [vmem:[#allocation30_spill] sm:$0xff] }
 0x4c0   :  { %1466 = vmatprep.mubr.f32.mxu1 %v3842_v7  ;;  %2251 = vmatprep.subr.bf16.mxu0 %v2250_v46  ;;  %v4524_v7 = vunpack.i.l.bf16 %v3972_v4  ;;  %v1746_v4 = vsel %vm149_vm3, %v1743_v13, %v3980_v1  ;;  %v4527_v1 = vld [vmem:[#allocation16_spill] sm:$0xff]  ;;  %v1805_v24 = vsel %vm206_vm5, %v1799_v23, %v3996_v26 }
 0x4c1   :  { %v2258_v5 = vpack.c.bf16 %v1746_v4, %v1728_v19  ;;  %v2678_v19 = vld [vmem:[%s4419_s7 + $0x10] sm:$0xff] }
 0x4c2   :  { %v1710_v30 = vsel %vm111_vm1, %v1707_v6, %v4524_v7  ;;  %v4530_v6 = vld [vmem:[#allocation19_spill] sm:$0xff]  ;;  %v2676_v7 = vld [vmem:[%s4419_s7] sm:$0xff] }
 0x4c3   :  { %2253 = vmatpush1.bf16.msra.mxu0 %v2252_v54  ;;  %1467 = vmatmul.mubr.f32.gmra.mrb[8].mxu1 %v3838_v47  ;;  %v2254_v59 = vpack.c.bf16 %v1710_v30, %v1692_v40  ;;  %v1729_v47 = vsel %vm130_vm2, %v2610_v56, %v1725_v43  ;;  %v1781_v56 = vpop.permute.xlu1 %1780 }
 0x4c4   :  { %1471 = vmatprep.mubr.f32.mxu1 %v4525_v60  ;;  %1914 = vmatprep.subr.mxu0 %v1819_v39  ;;  %v2260_v8 = vpack.c.bf16 %v1747_v52, %v1729_v47  ;;  %v1787_v18 = vsel %vm187_vm6, %v1781_v56, %v3990_v22  ;;  %v1782_v50 = vsel %vm187_vm6, %v2625_v58, %v1781_v56  ;;  %v4534_v22 = vld [vmem:[#allocation18_spill] sm:$0xff]  ;;  %v2677_v60 = vld [vmem:[%s4419_s7 + $0x8] sm:$0xff]  ;;  %v2679_v47 = vld [vmem:[%s4419_s7 + $0x18] sm:$0xff] }
 0x4c5   :  { %v2266_v14 = vpack.c.bf16 %v1805_v24, %v1787_v18 }
 0x4c7   :  { %1915 = vmatpush1.msra.mxu0 %v1820_v38  ;;  %1472 = vmatmul.mubr.f32.gmra.mrb[10].mxu1 %v4526_v62  ;;  %v1817_v26 = vpop.permute.xlu1 %1816 }
 0x4c8   :  { %2076 = vmatmul.mubr.msk.f32.vlgmr.msra.gmra.mrb[24].mxu0 %vm232_vm8, %v4171_v31  ;;  %2255 = vmatprep.subr.bf16.mxu0 %v2254_v59  ;;  %v1823_v28 = vsel %vm225_vm7, %v1817_v26, %v4073_v42  ;;  %v1818_v58 = vsel %vm225_vm7, %v1815_v36, %v1817_v26  ;;  %v4303_v42 = vld [vmem:[%s4419_s7 + $0x28] sm:$0xff] }
 0x4c9   :  { %1476 = vmatprep.mubr.f32.mxu1 %v4527_v1  ;;  %2257 = vmatpush1.bf16.msra.mxu0 %v2256_v35 }
 0x4ca   :  { %2259 = vmatprep.subr.bf16.mxu0 %v2258_v5  ;;  %2033 = vmatprep.mubr.f32.mxu0 %v4477_v25  ;;  %v1800_v25 = vsel %vm206_vm5, %v2630_v32, %v1799_v23  ;;  %v4536_v32 = vld [vmem:[#allocation25_spill] sm:$0xff] }
 0x4cb   :  { %1477 = vmatmul.mubr.f32.gmra.mrb[12].mxu1 %v4528_v27  ;;  %v2268_v37 = vpack.c.bf16 %v1800_v25, %v1782_v50 }
 0x4cc   :  { %1546 = vmatprep.mubr.f32.mxu1 %v4530_v6 }
 0x4cd   :  { %2261 = vmatpush1.bf16.msra.mxu0 %v2260_v8 }
 0x4ce   :  { %2263 = vmatprep.subr.bf16.mxu0 %v2262_v11 }
 0x4cf   :  { %1547 = vmatmul.mubr.f32.vlgmr.msra.gmra.mrb[14].mxu1 %v4532_v17 }
 0x4d0   :  { %1551 = vmatprep.mubr.f32.mxu1 %v4533_v49 }
 0x4d1   :  { %2265 = vmatpush1.bf16.msra.mxu0 %v2264_v61 }
 0x4d2   :  { %2267 = vmatprep.subr.bf16.mxu0 %v2266_v14 }
 0x4d3   :  { %1552 = vmatmul.mubr.f32.gmra.mrb[16].mxu1 %v4534_v22 }
 0x4d4   :  { %1556 = vmatprep.mubr.f32.mxu1 %v4535_v0 }
 0x4d5   :  { %2269 = vmatpush1.bf16.msra.mxu0 %v2268_v37  ;;  %v1628_v37 = vld [vmem:[%s4422_s6] sm:$0xff] }
 0x4d6   :  { %1985 = vmatprep.subr.mxu0 %v1823_v28 }
 0x4d7   :  { %1557 = vmatmul.mubr.f32.gmra.mrb[18].mxu1 %v4536_v32 }
 0x4d8   :  { %1561 = vmatprep.mubr.f32.mxu1 %v4537_v33 }
 0x4d9   :  { %1986 = vmatpush1.msra.mxu0 %v1818_v58 }
 0x4da   :  { %2077 = vmatmul.mubr.msk.f32.vlgmr.msra.gmra.mrb[26].mxu0 %vm232_vm8, %v4171_v31  ;;  %v4542_v31 = vld [vmem:[#allocation28_spill] sm:$0xff] }
 0x4db   :  { %1562 = vmatmul.mubr.f32.gmra.mrb[20].mxu1 %v4538_v34 }
 0x4dc   :  { %1566 = vmatprep.mubr.f32.mxu1 %v4303_v42 }
 0x4df   :  { %1567 = vmatmul.mubr.f32.gmra.mrb[22].mxu1 %v2675_v15 }
 0x4e0   :  { %1571 = vmatprep.mubr.f32.mxu1 %v4539_v45 }
 0x4e3   :  { %1572 = vmatmul.mubr.f32.gmra.mrb[24].mxu1 %v4540_v44 }
 0x4e4   :  { %1576 = vmatprep.mubr.f32.mxu1 %v4541_v9 }
 0x4e7   :  { %1577 = vmatmul.mubr.f32.gmra.mrb[8].mxu1 %v4542_v31 }
 0x4e8   :  { %1581 = vmatprep.mubr.f32.mxu1 %v4543_v21 }
 0x4eb   :  { %1582 = vmatmul.mubr.f32.gmra.mrb[10].mxu1 %v4544_v41 }
 0x4ec   :  { %1586 = vmatprep.mubr.f32.mxu1 %v4545_v20 }
 0x4ef   :  { %1587 = vmatmul.mubr.f32.gmra.mrb[12].mxu1 %v4546_v53 }
 0x571   :  { %v1328_v2 = vpop.f32.mrb[10].mxu0 }
 0x572   :  { %v1330_v12 = vpop.f32.mrb[11].mxu0 }
 0x575   :  { %v1333_v46 = vpop.f32.mrb[12].mxu0 }
 0x576   :  { %v1335_v36 = vpop.f32.mrb[13].mxu0 }
 0x579   :  { %v1338_v54 = vpop.f32.mrb[14].mxu0 }
 0x57a   :  { %v1340_v63 = vpop.f32.mrb[15].mxu0 }
 0x57d   :  { %v1343_v43 = vpop.f32.mrb[16].mxu0 }
 0x57e   :  { %v1345_v39 = vpop.f32.mrb[17].mxu0 }
 0x581   :  { %v1348_v3 = vpop.f32.mrb[18].mxu0 }
 0x582   :  { %v1350_v29 = vpop.f32.mrb[19].mxu0 }
 0x585   :  { %v4317_v13 = vpop.f32.mrb[20].mxu0 }
 0x586   :  { %v1355_v55 = vpop.f32.mrb[21].mxu0 }
 0x589   :  { %v1893_v40 = vpop.f32.mrb[22].mxu0 }
 0x58a   :  { %v2040_v30 = vadd.f32 %v2676_v7, %v1893_v40  ;;  %v1895_v38 = vpop.f32.mrb[23].mxu0  ;;  %v1631_v7 = vld [vmem:[%s4422_s6 + $0x18] sm:$0xff] }
 0x58b   :  { %v2041_v16 = vadd.f32 %v2677_v60, %v1895_v38 }
 0x58c   :  { %2046 = vst [vmem:[%s4421_s8] sm:$0xff] %v2040_v30 }
 0x58d   :  { %2047 = vst [vmem:[%s4421_s8 + $0x8] sm:$0xff] %v2041_v16 }
 0x59b   :  { %v1964_v35 = vpop.f32.mrb[24].mxu0 }
 0x59c   :  { %v2042_v4 = vadd.f32 %v2678_v19, %v1964_v35  ;;  %v1966_v59 = vpop.f32.mrb[25].mxu0 }
 0x59d   :  { %v2043_v52 = vadd.f32 %v2679_v47, %v1966_v59  ;;  %v1640_v47 = vmul.f32 0.99999, %v1631_v7 }
 0x59e   :  { %2048 = vst [vmem:[%s4421_s8 + $0x10] sm:$0xff] %v2042_v4 }
 0x59f   :  { %2049 = vst [vmem:[%s4421_s8 + $0x18] sm:$0xff] %v2043_v52  ;;  %v1632_v52 = vld [vmem:[%s4422_s6 + $0x20] sm:$0xff] }
 0x5a2   :  { %v1548_v62 = vpop.f32.mrb[14].mxu1 }
 0x5a3   :  { %v2272_v5 = vadd.f32 %v1548_v62, %v1328_v2  ;;  %v1550_v8 = vpop.f32.mrb[15].mxu1 }
 0x5a5   :  { %v1592_v1 = vand.u32 2147483647, %v2272_v5 }
 0x5a6   :  { %v1553_v51 = vpop.f32.mrb[16].mxu1 }
 0x5a7   :  { %v1601_v57 = vadd.f32 1e-08, %v1592_v1  ;;  %v2273_v23 = vadd.f32 %v1553_v51, %v1333_v46  ;;  %v1555_v56 = vpop.f32.mrb[17].mxu1  ;;  %v1630_v46 = vld [vmem:[%s4422_s6 + $0x10] sm:$0xff] }
 0x5a8   :  { %v1639_v40 = vmul.f32 0.99999, %v1630_v46 }
 0x5a9   :  { %2643 = vrcp.f32 %v1601_v57  ;;  %v1593_v27 = vand.u32 2147483647, %v2273_v23 }
 0x5aa   :  { %v1558_v48 = vpop.f32.mrb[18].mxu1 }
 0x5ab   :  { %v1602_v11 = vadd.f32 1e-08, %v1593_v27  ;;  %v2274_v6 = vadd.f32 %v1558_v48, %v1338_v54  ;;  %v1560_v10 = vpop.f32.mrb[19].mxu1  ;;  %v1641_v27 = vmul.f32 0.99999, %v1632_v52  ;;  %v1633_v48 = vld [vmem:[%s4422_s6 + $0x28] sm:$0xff] }
 0x5ad   :  { %2645 = vrcp.f32 %v1602_v11  ;;  %v1594_v61 = vand.u32 2147483647, %v2274_v6  ;;  %v2035_v24 = vpop.f32.mrb[26].mxu0 }
 0x5ae   :  { %v2044_v18 = vadd.f32 %v2675_v15, %v2035_v24  ;;  %v2037_v25 = vpop.f32.mrb[27].mxu0  ;;  %v1563_v50 = vpop.f32.mrb[20].mxu1  ;;  %v1629_v15 = vld [vmem:[%s4422_s6 + $0x8] sm:$0xff] }
 0x5af   :  { %v1603_v17 = vadd.f32 1e-08, %v1594_v61  ;;  %v2045_v14 = vadd.f32 %v4303_v42, %v2037_v25  ;;  %v2275_v49 = vadd.f32 %v1563_v50, %v1343_v43  ;;  %v1565_v26 = vpop.f32.mrb[21].mxu1  ;;  %v1637_v42 = vmul.f32 0.99999, %v1628_v37  ;;  %v1634_v61 = vld [vmem:[%s4422_s6 + $0x30] sm:$0xff] }
 0x5b0   :  { %2050 = vst [vmem:[%s4421_s8 + $0x20] sm:$0xff] %v2044_v18  ;;  %v1638_v12 = vmul.f32 0.99999, %v1629_v15  ;;  %v1642_v25 = vmul.f32 0.99999, %v1633_v48  ;;  %v1635_v26 = vld [vmem:[%s4422_s6 + $0x38] sm:$0xff] }
 0x5b1   :  { %2647 = vrcp.f32 %v1603_v17  ;;  %2051 = vst [vmem:[%s4421_s8 + $0x28] sm:$0xff] %v2045_v14  ;;  %v1595_v22 = vand.u32 2147483647, %v2275_v49 }
 0x5b2   :  { %v1568_v28 = vpop.f32.mrb[22].mxu1 }
 0x5b3   :  { %v2644_v0 = vpop.eup %2643  ;;  %v1604_v58 = vadd.f32 1e-08, %v1595_v22  ;;  %v2276_v32 = vadd.f32 %v1568_v28, %v1348_v3  ;;  %v1570_v33 = vpop.f32.mrb[23].mxu1 }
 0x5b4   :  { %v1619_v34 = vmul.f32 %v2644_v0, %v2272_v5  ;;  %v1636_v33 = vld [vmem:[%s4422_s6 + $0x40] sm:$0xff] }
 0x5b5   :  { %2649 = vrcp.f32 %v1604_v58  ;;  %v1596_v45 = vand.u32 2147483647, %v2276_v32 }
 0x5b6   :  { %v1646_v44 = vmul.f32 0.001, %v1619_v34  ;;  %v1573_v9 = vpop.f32.mrb[24].mxu1 }
 0x5b7   :  { %v2646_v31 = vpop.eup %2645  ;;  %v1605_v21 = vadd.f32 1e-08, %v1596_v45  ;;  %v2277_v41 = vadd.f32 %v1573_v9, %v4317_v13  ;;  %v1575_v20 = vpop.f32.mrb[25].mxu1 }
 0x5b8   :  { %v1655_v53 = vsub.f32 %v1637_v42, %v1646_v44  ;;  %v1620_v2 = vmul.f32 %v2646_v31, %v2273_v23  ;;  %v1645_v44 = vmul.f32 0.99999, %v1636_v33 }
 0x5b9   :  { %2651 = vrcp.f32 %v1605_v21  ;;  %v1597_v36 = vand.u32 2147483647, %v2277_v41 }
 0x5ba   :  { %1665 = vst.msk [vmem:[%s4423_s9] sm:$0xff] %vm1664_vm9, %v1655_v53  ;;  %v1647_v54 = vmul.f32 0.001, %v1620_v2  ;;  %v1578_v63 = vpop.f32.mrb[8].mxu1 }
 0x5bb   :  { %v2648_v43 = vpop.eup %2647  ;;  %v1606_v39 = vadd.f32 1e-08, %v1597_v36  ;;  %v1598_v3 = vand.u32 2147483647, %v1578_v63  ;;  %v1580_v29 = vpop.f32.mrb[9].mxu1 }
 0x5bc   :  { %v1656_v13 = vsub.f32 %v1638_v12, %v1647_v54  ;;  %v1621_v55 = vmul.f32 %v2648_v43, %v2274_v6 }
 0x5bd   :  { %2653 = vrcp.f32 %v1606_v39  ;;  %v1607_v30 = vadd.f32 1e-08, %v1598_v3 }
 0x5be   :  { %1666 = vst.msk [vmem:[%s4423_s9 + $0x8] sm:$0xff] %vm1664_vm9, %v1656_v13  ;;  %v1648_v38 = vmul.f32 0.001, %v1621_v55  ;;  %v1583_v60 = vpop.f32.mrb[10].mxu1 }
 0x5bf   :  { %v2650_v16 = vpop.eup %2649  ;;  %2655 = vrcp.f32 %v1607_v30  ;;  %v1599_v35 = vand.u32 2147483647, %v1583_v60  ;;  %v1585_v19 = vpop.f32.mrb[11].mxu1 }
 0x5c0   :  { %v1657_v4 = vsub.f32 %v1639_v40, %v1648_v38  ;;  %v1622_v59 = vmul.f32 %v2650_v16, %v2275_v49  ;;  %v1643_v49 = vmul.f32 0.99999, %v1634_v61 }
 0x5c1   :  { %v1608_v62 = vadd.f32 1e-08, %v1599_v35 }
 0x5c2   :  { %1667 = vst.msk [vmem:[%s4423_s9 + $0x10] sm:$0xff] %vm1664_vm9, %v1657_v4  ;;  %v1649_v5 = vmul.f32 0.001, %v1622_v59  ;;  %v1588_v8 = vpop.f32.mrb[12].mxu1 }
 0x5c3   :  { %v2652_v1 = vpop.eup %2651  ;;  %2657 = vrcp.f32 %v1608_v62  ;;  %v1600_v51 = vand.u32 2147483647, %v1588_v8  ;;  %v1590_v57 = vpop.f32.mrb[13].mxu1 }
 0x5c4   :  { %v1658_v23 = vsub.f32 %v1640_v47, %v1649_v5  ;;  %v1623_v56 = vmul.f32 %v2652_v1, %v2276_v32  ;;  %v1644_v32 = vmul.f32 0.99999, %v1635_v26 }
 0x5c5   :  { %v1609_v11 = vadd.f32 1e-08, %v1600_v51 }
 0x5c6   :  { %1668 = vst.msk [vmem:[%s4423_s9 + $0x18] sm:$0xff] %vm1664_vm9, %v1658_v23  ;;  %v1650_v6 = vmul.f32 0.001, %v1623_v56 }
 0x5c7   :  { %v2654_v10 = vpop.eup %2653  ;;  %2659 = vrcp.f32 %v1609_v11 }
 0x5c8   :  { %v1659_v24 = vsub.f32 %v1641_v27, %v1650_v6  ;;  %v1624_v18 = vmul.f32 %v2654_v10, %v2277_v41 }
 0x5c9   :  { %v2656_v50 = vpop.eup %2655 }
 0x5ca   :  { %1669 = vst.msk [vmem:[%s4423_s9 + $0x20] sm:$0xff] %vm1664_vm9, %v1659_v24  ;;  %v1651_v17 = vmul.f32 0.001, %v1624_v18  ;;  %v1625_v14 = vmul.f32 %v2656_v50, %v1578_v63 }
 0x5cc   :  { %v1660_v37 = vsub.f32 %v1642_v25, %v1651_v17  ;;  %v1652_v22 = vmul.f32 0.001, %v1625_v14 }
 0x5cd   :  { %v2658_v28 = vpop.eup %2657 }
 0x5ce   :  { %1670 = vst.msk [vmem:[%s4423_s9 + $0x28] sm:$0xff] %vm1664_vm9, %v1660_v37  ;;  %v1661_v0 = vsub.f32 %v1643_v49, %v1652_v22  ;;  %v1626_v58 = vmul.f32 %v2658_v28, %v1583_v60 }
 0x5d0   :  { %1671 = vst.msk [vmem:[%s4423_s9 + $0x30] sm:$0xff] %vm1664_vm9, %v1661_v0  ;;  %v1653_v34 = vmul.f32 0.001, %v1626_v58 }
 0x5d1   :  { %v2660_v42 = vpop.eup %2659 }
 0x5d2   :  { %v1662_v15 = vsub.f32 %v1644_v32, %v1653_v34  ;;  %v1627_v45 = vmul.f32 %v2660_v42, %v1588_v8 }
 0x5d4   :  { %1672 = vst.msk [vmem:[%s4423_s9 + $0x38] sm:$0xff] %vm1664_vm9, %v1662_v15  ;;  %v1654_v9 = vmul.f32 0.001, %v1627_v45 }
 0x5d6   :  { %v1663_v31 = vsub.f32 %v1645_v44, %v1654_v9 }
 0x5d8   :  { %1673 = vst.msk [vmem:[%s4423_s9 + $0x40] sm:$0xff] %vm1664_vm9, %v1663_v31 }

</bundles_post_ra>
